<compile_context>
chip_gen: v7x
topology: tpu7x:2x2x1
jax: 0.10.0
libtpu: 0.0.40
codegen_flags: <defaults>
</compile_context>

<pallas_src>
import functools

import jax
import jax.numpy as jnp
from jax.experimental import pallas as pl
from jax.experimental.pallas import tpu as pltpu


# ---------------------------------------------------------------------------
# helpers
# ---------------------------------------------------------------------------
def _cdiv(a, b):
    return (a + b - 1) // b


def _round_up(x, m):
    return _cdiv(x, m) * m


def _pick_bm(batch, block_m):
    """Batch tile: multiple of 128, big enough to amortize per-step overhead,
    but small enough that the grid has >=2 steps when the batch allows it
    (so both v7x TensorCores get work under dimension_semantics=parallel)."""
    block_m = max(128, _round_up(block_m, 128))
    two_step = max(128, _round_up(_cdiv(batch, 2), 128))
    return min(block_m, two_step)


def _softplus(z):
    # numerically stable softplus in f32
    return jnp.maximum(z, 0.0) + jnp.log(1.0 + jnp.exp(-jnp.abs(z)))


def _row_head(w_rows, act):
    """[R, H] x [TM, H] -> lane-dense [R, TM]: out[r, m] = sum_h w[r,h]*act[m,h]."""
    return jax.lax.dot_general(
        w_rows, act, (((1,), (1,)), ((), ())),
        preferred_element_type=jnp.float32)


# ---------------------------------------------------------------------------
# fused actor + critic forward kernel
# ---------------------------------------------------------------------------
def _actor_critic_kernel(x_ref, rnn_ref,
                         cw1_ref, cb1_ref, cw2a_ref, cw2b_ref, cb2_ref, cw3_ref,
                         aw1_ref, ab1_ref, aw2_ref, ab2_ref, awh_ref,
                         hb_ref,
                         out_ref):
    bf = jnp.bfloat16
    x = x_ref[...].astype(bf)        # [TM, S]  (cast in-kernel; no wrapper pass)
    r = rnn_ref[...].astype(bf)      # [TM, R]

    # ---- critic trunk -----------------------------------------------------
    h1 = jnp.tanh(
        jnp.dot(x, cw1_ref[...], preferred_element_type=jnp.float32)
        + cb1_ref[...])
    h2 = jnp.tanh(
        jnp.dot(h1.astype(bf), cw2a_ref[...], preferred_element_type=jnp.float32)
        + jnp.dot(r, cw2b_ref[...], preferred_element_type=jnp.float32)
        + cb2_ref[...])
    # value head, row oriented (lane-dense): [1,H2].[TM,H2]^T -> [1,TM], f32
    v = _row_head(cw3_ref[...], h2) + hb_ref[0]

    # ---- actor trunk ------------------------------------------------------
    a1 = jnp.tanh(
        jnp.dot(x, aw1_ref[...], preferred_element_type=jnp.float32)
        + ab1_ref[...])
    a2 = jnp.tanh(
        jnp.dot(a1.astype(bf), aw2_ref[...], preferred_element_type=jnp.float32)
        + ab2_ref[...])
    # mean + var heads in a single contraction: [2,H1].[TM,H1]^T -> [2,TM]
    heads = _row_head(awh_ref[...], a2)
    q = jnp.tanh(heads[0:1, :] + hb_ref[1])
    var = _softplus(heads[1:2, :] + hb_ref[2])

    # one lane-dense (3, TM) output block: row0=v, row1=q, row2=var
    out_ref[0:1, :] = v
    out_ref[1:2, :] = q
    out_ref[2:3, :] = var


@functools.partial(jax.jit, static_argnames=("block_m",))
def actor_critic_forward(state, rnn_state, actor_params, critic_params, *,
                         block_m=4096):
    """state [B, state_dim] f32, rnn_state [B, rnn_hidden] f32
       -> (action_mean [B,1], action_var [B,1], state_value [B,1]) f32."""
    B, S = state.shape
    R = rnn_state.shape[1]
    aw1, ab1, aw2, ab2, awm, abm, awv, abv = actor_params
    cw1, cb1, cw2a, cw2b, cb2, cw3, cb3 = critic_params
    H2 = cw1.shape[1]    # critic hidden (64)
    H1 = aw1.shape[1]    # actor hidden (16)
    assert cw3.shape == (H2, 1) and awm.shape == (H1, 1) and awv.shape == (H1, 1)

    bm = _pick_bm(B, block_m)
    grid = (_cdiv(B, bm),)   # ragged last block handled by Pallas

    bf = jnp.bfloat16
    # weights are tiny resident blocks (fetched once); bf16 halves their VMEM
    cw1b, cw2ab, cw2bb = cw1.astype(bf), cw2a.astype(bf), cw2b.astype(bf)
    aw1b, aw2b = aw1.astype(bf), aw2.astype(bf)
    cw3_row = cw3.reshape(1, H2).astype(jnp.float32)
    awh = jnp.concatenate([awm.reshape(1, H1), awv.reshape(1, H1)],
                          axis=0).astype(jnp.float32)          # [2, H1]
    head_b = jnp.concatenate([cb3.reshape(1), abm.reshape(1),
                              abv.reshape(1)]).astype(jnp.float32)  # [3] -> SMEM

    full = lambda shape: pl.BlockSpec(shape, lambda i: (0, 0))   # resident block

    out = pl.pallas_call(
        _actor_critic_kernel,
        grid=grid,
        in_specs=[
            pl.BlockSpec((bm, S), lambda i: (i, 0)),   # state tile (f32, no pad)
            pl.BlockSpec((bm, R), lambda i: (i, 0)),   # rnn_state tile
            full((S, H2)), full((1, H2)),              # critic fc1
            full((H2, H2)), full((R, H2)), full((1, H2)),  # critic fc2 (split)
            full((1, H2)),                             # critic value head (row)
            full((S, H1)), full((1, H1)),              # actor fc1
            full((H1, H1)), full((1, H1)),             # actor fc2
            full((2, H1)),                             # stacked mean/var heads
            pl.BlockSpec(memory_space=pltpu.MemorySpace.SMEM),  # head biases
        ],
        out_specs=pl.BlockSpec((3, bm), lambda i: (0, i)),       # lane-dense
        out_shape=jax.ShapeDtypeStruct((3, B), jnp.float32),
        compiler_params=pltpu.CompilerParams(
            dimension_semantics=("parallel",)),
    )(state, rnn_state,
      cw1b, cb1, cw2ab, cw2bb, cb2, cw3_row,
      aw1b, ab1, aw2b, ab2, awh,
      head_b)

    v = out[0, :, None]
    q = out[1, :, None]
    var = out[2, :, None]
    return q, var, v


# ---------------------------------------------------------------------------
# synthetic parameters (match the module's init; weights stored [in, out])
# ---------------------------------------------------------------------------
def make_critic_params(key, state_dim, rnn_hidden_dim, hidden_dim=64):
    k1, k2, k3, k4 = jax.random.split(key, 4)
    ortho = jax.nn.initializers.orthogonal(scale=1.0)
    w1 = ortho(k1, (state_dim, hidden_dim), jnp.float32)
    b1 = jnp.zeros((1, hidden_dim), jnp.float32)
    w2 = ortho(k2, (hidden_dim + rnn_hidden_dim, hidden_dim), jnp.float32)
    w2a, w2b = w2[:hidden_dim], w2[hidden_dim:]      # h1-part / rnn_state-part
    b2 = jnp.zeros((1, hidden_dim), jnp.float32)
    bound = 1.0 / jnp.sqrt(hidden_dim)
    w3 = jax.random.uniform(k3, (hidden_dim, 1), jnp.float32, -bound, bound)
    b3 = jax.random.uniform(k4, (1, 1), jnp.float32, -bound, bound)
    return (w1, b1, w2a, w2b, b2, w3, b3)


def make_actor_params(key, state_dim, hidden_dim=16, n_actions=1):
    ks = jax.random.split(key, 8)

    def lin(kw, kb, fan_in, fan_out):
        bound = 1.0 / jnp.sqrt(fan_in)
        w = jax.random.uniform(kw, (fan_in, fan_out), jnp.float32, -bound, bound)
        b = jax.random.uniform(kb, (1, fan_out), jnp.float32, -bound, bound)
        return w, b

    w1, b1 = lin(ks[0], ks[1], state_dim, hidden_dim)
    w2, b2 = lin(ks[2], ks[3], hidden_dim, hidden_dim)
    wm, bm = lin(ks[4], ks[5], hidden_dim, n_actions)
    wv, bv = lin(ks[6], ks[7], hidden_dim, n_actions)
    return (w1, b1, w2, b2, wm, bm, wv, bv)


# ---------------------------------------------------------------------------
# pure-JAX reference (same bf16 quantization points as the kernel; heads f32)
# ---------------------------------------------------------------------------
def reference_actor_critic(state, rnn_state, actor_params, critic_params):
    bf = jnp.bfloat16
    aw1, ab1, aw2, ab2, awm, abm, awv, abv = actor_params
    cw1, cb1, cw2a, cw2b, cb2, cw3, cb3 = critic_params
    # critic
    h1 = jnp.tanh(jnp.dot(state.astype(bf), cw1.astype(bf),
                          preferred_element_type=jnp.float32) + cb1)
    h2 = jnp.tanh(jnp.dot(h1.astype(bf), cw2a.astype(bf),
                          preferred_element_type=jnp.float32)
                  + jnp.dot(rnn_state.astype(bf), cw2b.astype(bf),
                            preferred_element_type=jnp.float32)
                  + cb2)
    v = h2 @ cw3 + cb3
    # actor
    a1 = jnp.tanh(jnp.dot(state.astype(bf), aw1.astype(bf),
                          preferred_element_type=jnp.float32) + ab1)
    a2 = jnp.tanh(jnp.dot(a1.astype(bf), aw2.astype(bf),
                          preferred_element_type=jnp.float32) + ab2)
    q = jnp.tanh(a2 @ awm + abm)
    var = jax.nn.softplus(a2 @ awv + abv)
    return q, var, v


# ---------------------------------------------------------------------------
if __name__ == "__main__":
    STATE_DIM, RNN_HIDDEN = 16, 32
    B = 300   # not a multiple of 128: exercises the ragged last block

    key = jax.random.PRNGKey(0)
    kx, kh, kc, ka = jax.random.split(key, 4)
    state = jax.random.normal(kx, (B, STATE_DIM), jnp.float32)
    rnn_state = jax.random.normal(kh, (B, RNN_HIDDEN), jnp.float32)
    critic_params = make_critic_params(kc, STATE_DIM, RNN_HIDDEN, hidden_dim=64)
    actor_params = make_actor_params(ka, STATE_DIM, hidden_dim=16, n_actions=1)

    # default block_m=4096 collapses to bm=256 here -> 2 grid steps, last ragged
    q, var, v = actor_critic_forward(state, rnn_state, actor_params, critic_params)
    jax.block_until_ready((q, var, v))

    q_ref, var_ref, v_ref = reference_actor_critic(state, rnn_state,
                                                   actor_params, critic_params)

    assert q.shape == (B, 1) and var.shape == (B, 1) and v.shape == (B, 1)
    assert jnp.allclose(v, v_ref, atol=2e-3, rtol=2e-3)
    assert jnp.allclose(q, q_ref, atol=2e-3, rtol=2e-3)
    assert jnp.allclose(var, var_ref, atol=2e-3, rtol=2e-3)
    assert bool(jnp.all(var > 0))

    # TODO(synk): PPOCritic.rnn (nn.GRU, sequential recurrence) and the
    # MultivariateNormal/Categorical sampling + log_prob/entropy in
    # ActorCritic.act()/evaluate() are outside the MLP forward passes and are
    # not kernelized.
    print("KERNEL_OK")
</pallas_src>

<mosaic_0001>
module attributes {stable_mosaic.version = 11 : i64} {
  func.func @_actor_critic_kernel(%arg0: i32, %arg1: memref<256x16xf32, #tpu.memory_space<vmem>>, %arg2: memref<256x32xf32, #tpu.memory_space<vmem>>, %arg3: memref<16x64xbf16, #tpu.memory_space<vmem>>, %arg4: memref<1x64xf32, #tpu.memory_space<vmem>>, %arg5: memref<64x64xbf16, #tpu.memory_space<vmem>>, %arg6: memref<32x64xbf16, #tpu.memory_space<vmem>>, %arg7: memref<1x64xf32, #tpu.memory_space<vmem>>, %arg8: memref<1x64xf32, #tpu.memory_space<vmem>>, %arg9: memref<16x16xbf16, #tpu.memory_space<vmem>>, %arg10: memref<1x16xf32, #tpu.memory_space<vmem>>, %arg11: memref<16x16xbf16, #tpu.memory_space<vmem>>, %arg12: memref<1x16xf32, #tpu.memory_space<vmem>>, %arg13: memref<2x16xf32, #tpu.memory_space<vmem>>, %arg14: memref<3xf32, #tpu.memory_space<smem>>, %arg15: memref<3x256xf32, #tpu.memory_space<vmem>>) attributes {dimension_semantics = [#tpu.dimension_semantics<parallel>], iteration_bounds = array<i64: 2>, scalar_prefetch = 0 : i64, scratch_operands = 0 : i64, tpu.core_type = #tpu.core_type<tc>, window_params = [{transform_indices = @transform_0, window_bounds = array<i64: 256, 16>}, {transform_indices = @transform_1, window_bounds = array<i64: 256, 32>}, {pipeline_mode = #tpu.pipeline_mode<synchronous>, transform_indices = @transform_2, window_bounds = array<i64: 16, 64>}, {pipeline_mode = #tpu.pipeline_mode<synchronous>, transform_indices = @transform_3, window_bounds = array<i64: 1, 64>}, {pipeline_mode = #tpu.pipeline_mode<synchronous>, transform_indices = @transform_4, window_bounds = array<i64: 64, 64>}, {pipeline_mode = #tpu.pipeline_mode<synchronous>, transform_indices = @transform_5, window_bounds = array<i64: 32, 64>}, {pipeline_mode = #tpu.pipeline_mode<synchronous>, transform_indices = @transform_6, window_bounds = array<i64: 1, 64>}, {pipeline_mode = #tpu.pipeline_mode<synchronous>, transform_indices = @transform_7, window_bounds = array<i64: 1, 64>}, {pipeline_mode = #tpu.pipeline_mode<synchronous>, transform_indices = @transform_8, window_bounds = array<i64: 16, 16>}, {pipeline_mode = #tpu.pipeline_mode<synchronous>, transform_indices = @transform_9, window_bounds = array<i64: 1, 16>}, {pipeline_mode = #tpu.pipeline_mode<synchronous>, transform_indices = @transform_10, window_bounds = array<i64: 16, 16>}, {pipeline_mode = #tpu.pipeline_mode<synchronous>, transform_indices = @transform_11, window_bounds = array<i64: 1, 16>}, {pipeline_mode = #tpu.pipeline_mode<synchronous>, transform_indices = @transform_12, window_bounds = array<i64: 2, 16>}, {transform_indices = @transform_13, window_bounds = array<i64: 3>}, {transform_indices = @transform_14, window_bounds = array<i64: 3, 256>}]} {
    %c0 = arith.constant 0 : index
    %c0_0 = arith.constant 0 : index
    %0 = vector.load %arg1[%c0, %c0_0] : memref<256x16xf32, #tpu.memory_space<vmem>>, vector<256x16xf32>
    %1 = arith.truncf %0 : vector<256x16xf32> to vector<256x16xbf16>
    %c0_1 = arith.constant 0 : index
    %c0_2 = arith.constant 0 : index
    %2 = vector.load %arg2[%c0_1, %c0_2] : memref<256x32xf32, #tpu.memory_space<vmem>>, vector<256x32xf32>
    %3 = arith.truncf %2 : vector<256x32xf32> to vector<256x32xbf16>
    %c0_3 = arith.constant 0 : index
    %c0_4 = arith.constant 0 : index
    %4 = vector.load %arg3[%c0_3, %c0_4] : memref<16x64xbf16, #tpu.memory_space<vmem>>, vector<16x64xbf16>
    %cst = arith.constant dense<0.000000e+00> : vector<256x64xf32>
    %5 = tpu.matmul %1, %4, %cst {dimension_numbers = #tpu.dot_dimension_numbers<[1], [0], [0], [1], [0, 0, 1, 1], [], []>} : vector<256x16xbf16>, vector<16x64xbf16>, vector<256x64xf32> -> vector<256x64xf32>
    %c0_5 = arith.constant 0 : index
    %c0_6 = arith.constant 0 : index
    %6 = vector.load %arg4[%c0_5, %c0_6] : memref<1x64xf32, #tpu.memory_space<vmem>>, vector<1x64xf32>
    %7 = vector.broadcast %6 : vector<1x64xf32> to vector<256x64xf32>
    %8 = arith.addf %5, %7 : vector<256x64xf32>
    %9 = math.tanh %8 : vector<256x64xf32>
    %10 = arith.truncf %9 : vector<256x64xf32> to vector<256x64xbf16>
    %c0_7 = arith.constant 0 : index
    %c0_8 = arith.constant 0 : index
    %11 = vector.load %arg5[%c0_7, %c0_8] : memref<64x64xbf16, #tpu.memory_space<vmem>>, vector<64x64xbf16>
    %cst_9 = arith.constant dense<0.000000e+00> : vector<256x64xf32>
    %12 = tpu.matmul %10, %11, %cst_9 {dimension_numbers = #tpu.dot_dimension_numbers<[1], [0], [0], [1], [0, 0, 1, 1], [], []>} : vector<256x64xbf16>, vector<64x64xbf16>, vector<256x64xf32> -> vector<256x64xf32>
    %c0_10 = arith.constant 0 : index
    %c0_11 = arith.constant 0 : index
    %13 = vector.load %arg6[%c0_10, %c0_11] : memref<32x64xbf16, #tpu.memory_space<vmem>>, vector<32x64xbf16>
    %cst_12 = arith.constant dense<0.000000e+00> : vector<256x64xf32>
    %14 = tpu.matmul %3, %13, %cst_12 {dimension_numbers = #tpu.dot_dimension_numbers<[1], [0], [0], [1], [0, 0, 1, 1], [], []>} : vector<256x32xbf16>, vector<32x64xbf16>, vector<256x64xf32> -> vector<256x64xf32>
    %15 = arith.addf %12, %14 : vector<256x64xf32>
    %c0_13 = arith.constant 0 : index
    %c0_14 = arith.constant 0 : index
    %16 = vector.load %arg7[%c0_13, %c0_14] : memref<1x64xf32, #tpu.memory_space<vmem>>, vector<1x64xf32>
    %17 = vector.broadcast %16 : vector<1x64xf32> to vector<256x64xf32>
    %18 = arith.addf %15, %17 : vector<256x64xf32>
    %19 = math.tanh %18 : vector<256x64xf32>
    %c0_15 = arith.constant 0 : index
    %c0_16 = arith.constant 0 : index
    %20 = vector.load %arg8[%c0_15, %c0_16] : memref<1x64xf32, #tpu.memory_space<vmem>>, vector<1x64xf32>
    %cst_17 = arith.constant dense<0.000000e+00> : vector<1x256xf32>
    %21 = tpu.matmul %20, %19, %cst_17 {dimension_numbers = #tpu.dot_dimension_numbers<[1], [1], [0], [0], [0, 0, 1, 0], [], []>} : vector<1x64xf32>, vector<256x64xf32>, vector<1x256xf32> -> vector<1x256xf32>
    %c0_18 = arith.constant 0 : index
    %22 = memref.load %arg14[%c0_18] : memref<3xf32, #tpu.memory_space<smem>>
    %23 = vector.broadcast %22 : f32 to vector<1x256xf32>
    %24 = arith.addf %21, %23 : vector<1x256xf32>
    %c0_19 = arith.constant 0 : index
    %c0_20 = arith.constant 0 : index
    %25 = vector.load %arg9[%c0_19, %c0_20] : memref<16x16xbf16, #tpu.memory_space<vmem>>, vector<16x16xbf16>
    %cst_21 = arith.constant dense<0.000000e+00> : vector<256x16xf32>
    %26 = tpu.matmul %1, %25, %cst_21 {dimension_numbers = #tpu.dot_dimension_numbers<[1], [0], [0], [1], [0, 0, 1, 1], [], []>} : vector<256x16xbf16>, vector<16x16xbf16>, vector<256x16xf32> -> vector<256x16xf32>
    %c0_22 = arith.constant 0 : index
    %c0_23 = arith.constant 0 : index
    %27 = vector.load %arg10[%c0_22, %c0_23] : memref<1x16xf32, #tpu.memory_space<vmem>>, vector<1x16xf32>
    %28 = vector.broadcast %27 : vector<1x16xf32> to vector<256x16xf32>
    %29 = arith.addf %26, %28 : vector<256x16xf32>
    %30 = math.tanh %29 : vector<256x16xf32>
    %31 = arith.truncf %30 : vector<256x16xf32> to vector<256x16xbf16>
    %c0_24 = arith.constant 0 : index
    %c0_25 = arith.constant 0 : index
    %32 = vector.load %arg11[%c0_24, %c0_25] : memref<16x16xbf16, #tpu.memory_space<vmem>>, vector<16x16xbf16>
    %cst_26 = arith.constant dense<0.000000e+00> : vector<256x16xf32>
    %33 = tpu.matmul %31, %32, %cst_26 {dimension_numbers = #tpu.dot_dimension_numbers<[1], [0], [0], [1], [0, 0, 1, 1], [], []>} : vector<256x16xbf16>, vector<16x16xbf16>, vector<256x16xf32> -> vector<256x16xf32>
    %c0_27 = arith.constant 0 : index
    %c0_28 = arith.constant 0 : index
    %34 = vector.load %arg12[%c0_27, %c0_28] : memref<1x16xf32, #tpu.memory_space<vmem>>, vector<1x16xf32>
    %35 = vector.broadcast %34 : vector<1x16xf32> to vector<256x16xf32>
    %36 = arith.addf %33, %35 : vector<256x16xf32>
    %37 = math.tanh %36 : vector<256x16xf32>
    %c0_29 = arith.constant 0 : index
    %c0_30 = arith.constant 0 : index
    %38 = vector.load %arg13[%c0_29, %c0_30] : memref<2x16xf32, #tpu.memory_space<vmem>>, vector<2x16xf32>
    %cst_31 = arith.constant dense<0.000000e+00> : vector<2x256xf32>
    %39 = tpu.matmul %38, %37, %cst_31 {dimension_numbers = #tpu.dot_dimension_numbers<[1], [1], [0], [0], [0, 0, 1, 0], [], []>} : vector<2x16xf32>, vector<256x16xf32>, vector<2x256xf32> -> vector<2x256xf32>
    %40 = vector.extract_strided_slice %39 {offsets = [0, 0], sizes = [1, 256], strides = [1, 1]} : vector<2x256xf32> to vector<1x256xf32>
    %c1 = arith.constant 1 : index
    %41 = memref.load %arg14[%c1] : memref<3xf32, #tpu.memory_space<smem>>
    %42 = vector.broadcast %41 : f32 to vector<1x256xf32>
    %43 = arith.addf %40, %42 : vector<1x256xf32>
    %44 = math.tanh %43 : vector<1x256xf32>
    %45 = vector.extract_strided_slice %39 {offsets = [1, 0], sizes = [1, 256], strides = [1, 1]} : vector<2x256xf32> to vector<1x256xf32>
    %c2 = arith.constant 2 : index
    %46 = memref.load %arg14[%c2] : memref<3xf32, #tpu.memory_space<smem>>
    %47 = vector.broadcast %46 : f32 to vector<1x256xf32>
    %48 = arith.addf %45, %47 : vector<1x256xf32>
    %cst_32 = arith.constant 0.000000e+00 : f32
    %49 = vector.broadcast %cst_32 : f32 to vector<1x256xf32>
    %50 = arith.maximumf %48, %49 : vector<1x256xf32>
    %51 = math.absf %48 : vector<1x256xf32>
    %cst_33 = arith.constant 0.000000e+00 : f32
    %52 = vector.broadcast %cst_33 : f32 to vector<1x256xf32>
    %53 = arith.subf %52, %51 : vector<1x256xf32>
    %54 = math.exp %53 : vector<1x256xf32>
    %cst_34 = arith.constant 1.000000e+00 : f32
    %55 = vector.broadcast %cst_34 : f32 to vector<1x256xf32>
    %56 = arith.addf %55, %54 : vector<1x256xf32>
    %57 = math.log %56 : vector<1x256xf32>
    %58 = arith.addf %50, %57 : vector<1x256xf32>
    %c0_35 = arith.constant 0 : index
    %c0_36 = arith.constant 0 : index
    %59 = vector.load %arg15[%c0_35, %c0_36] : memref<3x256xf32, #tpu.memory_space<vmem>>, vector<1x256xf32>
    tpu.vector_store %arg15[%c0_35, %c0_36], %24 {strides = array<i32>} : memref<3x256xf32, #tpu.memory_space<vmem>>, vector<1x256xf32>,
    %c1_37 = arith.constant 1 : index
    %c0_38 = arith.constant 0 : index
    %60 = vector.load %arg15[%c1_37, %c0_38] : memref<3x256xf32, #tpu.memory_space<vmem>>, vector<1x256xf32>
    tpu.vector_store %arg15[%c1_37, %c0_38], %44 {strides = array<i32>} : memref<3x256xf32, #tpu.memory_space<vmem>>, vector<1x256xf32>,
    %c2_39 = arith.constant 2 : index
    %c0_40 = arith.constant 0 : index
    %61 = vector.load %arg15[%c2_39, %c0_40] : memref<3x256xf32, #tpu.memory_space<vmem>>, vector<1x256xf32>
    tpu.vector_store %arg15[%c2_39, %c0_40], %58 {strides = array<i32>} : memref<3x256xf32, #tpu.memory_space<vmem>>, vector<1x256xf32>,
    return
  }
  func.func @transform_0(%arg0: i32) -> (i32, i32) {
    %c0_i32 = arith.constant 0 : i32
    %c0_i32_0 = arith.constant 0 : i32
    return %arg0, %c0_i32 : i32, i32
  }
  func.func @transform_1(%arg0: i32) -> (i32, i32) {
    %c0_i32 = arith.constant 0 : i32
    %c0_i32_0 = arith.constant 0 : i32
    return %arg0, %c0_i32 : i32, i32
  }
  func.func @transform_2(%arg0: i32) -> (i32, i32) {
    %c0_i32 = arith.constant 0 : i32
    %c0_i32_0 = arith.constant 0 : i32
    %c0_i32_1 = arith.constant 0 : i32
    return %c0_i32, %c0_i32_0 : i32, i32
  }
  func.func @transform_3(%arg0: i32) -> (i32, i32) {
    %c0_i32 = arith.constant 0 : i32
    %c0_i32_0 = arith.constant 0 : i32
    %c0_i32_1 = arith.constant 0 : i32
    return %c0_i32, %c0_i32_0 : i32, i32
  }
  func.func @transform_4(%arg0: i32) -> (i32, i32) {
    %c0_i32 = arith.constant 0 : i32
    %c0_i32_0 = arith.constant 0 : i32
    %c0_i32_1 = arith.constant 0 : i32
    return %c0_i32, %c0_i32_0 : i32, i32
  }
  func.func @transform_5(%arg0: i32) -> (i32, i32) {
    %c0_i32 = arith.constant 0 : i32
    %c0_i32_0 = arith.constant 0 : i32
    %c0_i32_1 = arith.constant 0 : i32
    return %c0_i32, %c0_i32_0 : i32, i32
  }
  func.func @transform_6(%arg0: i32) -> (i32, i32) {
    %c0_i32 = arith.constant 0 : i32
    %c0_i32_0 = arith.constant 0 : i32
    %c0_i32_1 = arith.constant 0 : i32
    return %c0_i32, %c0_i32_0 : i32, i32
  }
  func.func @transform_7(%arg0: i32) -> (i32, i32) {
    %c0_i32 = arith.constant 0 : i32
    %c0_i32_0 = arith.constant 0 : i32
    %c0_i32_1 = arith.constant 0 : i32
    return %c0_i32, %c0_i32_0 : i32, i32
  }
  func.func @transform_8(%arg0: i32) -> (i32, i32) {
    %c0_i32 = arith.constant 0 : i32
    %c0_i32_0 = arith.constant 0 : i32
    %c0_i32_1 = arith.constant 0 : i32
    return %c0_i32, %c0_i32_0 : i32, i32
  }
  func.func @transform_9(%arg0: i32) -> (i32, i32) {
    %c0_i32 = arith.constant 0 : i32
    %c0_i32_0 = arith.constant 0 : i32
    %c0_i32_1 = arith.constant 0 : i32
    return %c0_i32, %c0_i32_0 : i32, i32
  }
  func.func @transform_10(%arg0: i32) -> (i32, i32) {
    %c0_i32 = arith.constant 0 : i32
    %c0_i32_0 = arith.constant 0 : i32
    %c0_i32_1 = arith.constant 0 : i32
    return %c0_i32, %c0_i32_0 : i32, i32
  }
  func.func @transform_11(%arg0: i32) -> (i32, i32) {
    %c0_i32 = arith.constant 0 : i32
    %c0_i32_0 = arith.constant 0 : i32
    %c0_i32_1 = arith.constant 0 : i32
    return %c0_i32, %c0_i32_0 : i32, i32
  }
  func.func @transform_12(%arg0: i32) -> (i32, i32) {
    %c0_i32 = arith.constant 0 : i32
    %c0_i32_0 = arith.constant 0 : i32
    %c0_i32_1 = arith.constant 0 : i32
    return %c0_i32, %c0_i32_0 : i32, i32
  }
  func.func @transform_13(%arg0: i32) -> i32 {
    %c0_i32 = arith.constant 0 : i32
    %c0_i32_0 = arith.constant 0 : i32
    return %c0_i32 : i32
  }
  func.func @transform_14(%arg0: i32) -> (i32, i32) {
    %c0_i32 = arith.constant 0 : i32
    %c0_i32_0 = arith.constant 0 : i32
    return %c0_i32, %arg0 : i32, i32
  }
}

</mosaic_0001>

<bundles_post_ra>
// kernel: actor_critic_forward.1
= control target key start
LH: loop header
LB: loop body
LE: loop exit
PB: predicated region body
PF: predicated region fallthrough
CT: control target
= control target key end

     0   :  { %s5432_s0 = inlined_call_operand.vmem [shape: f32[300,16], index: 0, kind: input, shape index: {}]   ;;  %s5433_s1 = inlined_call_operand.vmem [shape: f32[300,32], index: 1, kind: input, shape index: {}]   ;;  %s5434_s2 = inlined_call_operand.vmem [shape: bf16[16,64], index: 2, kind: input, shape index: {}]   ;;  %s5435_s3 = inlined_call_operand.vmem [shape: f32[1,64], index: 3, kind: input, shape index: {}]   ;;  %s5436_s4 = inlined_call_operand.vmem [shape: bf16[64,64], index: 4, kind: input, shape index: {}]   ;;  %s5437_s5 = inlined_call_operand.vmem [shape: bf16[32,64], index: 5, kind: input, shape index: {}]   ;;  %s5438_s6 = inlined_call_operand.vmem [shape: f32[1,64], index: 6, kind: input, shape index: {}]   ;;  %s5439_s7 = inlined_call_operand.vmem [shape: f32[1,64], index: 7, kind: input, shape index: {}]   ;;  %s5440_s8 = inlined_call_operand.vmem [shape: bf16[16,16], index: 8, kind: input, shape index: {}]   ;;  %s5441_s9 = inlined_call_operand.vmem [shape: f32[1,16], index: 9, kind: input, shape index: {}]   ;;  %s5442_s10 = inlined_call_operand.vmem [shape: bf16[16,16], index: 10, kind: input, shape index: {}]   ;;  %s5443_s11 = inlined_call_operand.vmem [shape: f32[1,16], index: 11, kind: input, shape index: {}]   ;;  %s5444_s12 = inlined_call_operand.vmem [shape: f32[2,16], index: 12, kind: input, shape index: {}]   ;;  %s5445_s13 = inlined_call_operand.vmem [shape: f32[3], index: 13, kind: input, shape index: {}]   ;;  %s5446_s14 = inlined_call_operand.vmem [shape: f32[3,300], index: 14, kind: output, shape index: {}]  }
   0x1   :  { %5447 = sst [smem:[#allocation6_spill]] %s5432_s0 }
   0x2   :  { %5448 = sst [smem:[#allocation7_spill]] %s5433_s1 }
   0x3   :  { %5449 = sst [smem:[#allocation8_spill]] %s5434_s2 }
   0x4   :  { %5450 = sst [smem:[#allocation9_spill]] %s5435_s3 }
   0x5   :  { %5451 = sst [smem:[#allocation10_spill]] %s5436_s4 }
   0x6   :  { %5452 = sst [smem:[#allocation11_spill]] %s5437_s5 }
   0x7   :  { %19 = vsyncpa [#allocation3], 0  ;;  %s4307_s29 = smov 0   ;;  %s4309_s30 = smov 0  }
   0x8   :  { %s4311_s15 = smov 0  }
   0x9 LB: > { %s4320_s16 = sadd.s32 4294967295, %s4162_s15   ;;  %s4322_s17 = sadd.s32 1, %s4162_s15   ;;  %s4162_s15 = sphi %s4311_s15, %s5481_s15   ;;  %s4158_s30 = sphi %s4309_s30, %s5480_s30   ;;  %s4154_s29 = sphi %s4307_s29, %s5479_s29  }
   0xa   : > { %s333_s18 = ssub.s32 %s4162_s15, %s4322_s17  ;;  %s336_s19 = sadd.s32 1, %s4158_s30 }
   0xb   : > { %p334_p0 = scmp.eq.s32.totalorder %s333_s18, 0  ;;  %p346_p1 = scmp.ne.s32.totalorder %s4158_s30, %s4154_s29 }
   0xc   : > { %p347_p2 = scmp.eq.s32.totalorder %s4320_s16, 1  ;;  %p2944_p3 = scmp.ge.s32.totalorder %s4162_s15, 1 }
   0xd   : > { %s4330_s20 = scalar_select %p334_p0, %s4158_s30, %s336_s19  }
   0xe   : > { %p4332_p4 = por %p347_p2, %p346_p1  ;;  %p360_p5 = scmp.lt.s32.totalorder %s4162_s15, 3 }
   0xf   : > { %p3622_p6 = scmp.eq.s32.totalorder %s4320_s16, 0  ;;  %s406_s25 = sshll.u32 %s5445_s13, 4  ;;  %s407_s25 = int_to_ptr.vmem [resolvable:$true] %s406_s25 }
  0x10   : > { %p4337_p7 = pnand %p2944_p3, %p360_p5  ;;  %s4057_s26 = scalar_lea.vmem %s407_s25, 16 }
  0x11   : > { %p4058_p10 = scmp.ne.s32.totalorder %s407_s25, %s4057_s26  ;;  %p4065_p0 = scmp.lt.s32.totalorder %s407_s25, %s407_s25 }
  0x12   : > { %p3618_p8 = pneg %p4337_p7  ;;  %p4066_p1 = scmp.lt.s32.totalorder %s4057_s26, %s4057_s26 }
  0x14   : > { %p3619_p9 = pnand %p3622_p6, %p3618_p8  ;;  %p4067_p2 = por %p4066_p1, %p4065_p0 }
  0x16   : > { %p4059_p11 = pneg %p3619_p9 }
  0x18   : > { %p4060_p12 = pnand %p4059_p11, %p4058_p10 }
  0x1a   : > { %p4061_p13 = pneg %p4060_p12 }
  0x1c   : > { %p4068_p3 = pnand %p4067_p2, %p4061_p13 }
  0x1e   : > { %4071 = shalt.err (!%p4068_p3)
}
  0x1f   : > { %s4228_s27 = smov [#allocation2]   ;;  %453 = sbr.rel (%p4337_p7) target bundleno = 1595 (0x63b), region = 76 }
  0x20   : > { %3621 = dma.vmem_to_smem (!%p3619_p9), %s407_s25, 16, %s4228_s27, [#allocation3]  }
  0x26   : > { %4149 = dma.done.wait (%p3622_p6), [#allocation3], 16  }
  0x27   : > { %4151 = vsyncadd (%p3622_p6), [#allocation3], 4294967280 }
  0x28   : > { %459 = sfence }
  0x29   : > { %s5455_s2 = sld [smem:[#allocation8_spill]]  ;;  %s2950_s18 = sshll.u32 %s4320_s16, 5  ;;  %vm657_vm0 = vcmask 130048   ;;  %vm939_vm1 = vcmask 261120   ;;  %vm1173_vm2 = vcmask 523264  }
  0x2a   : > { %p517_p5 = scmp.lt.s32.totalorder %s2950_s18, 37  ;;  %s5456_s5 = sld [smem:[#allocation11_spill]]  ;;  %vm4669_vm3 = vmpackc.low %vm1173_vm2, %vm1173_vm2 }
  0x2b   : > { %s5457_s0 = sld [smem:[#allocation6_spill]]  ;;  %s5458_s4 = sld [smem:[#allocation10_spill]]  ;;  %vm4930_vm5 = vmpackc.low %vm657_vm0, %vm657_vm0 }
  0x2c   : > { %s5483_s18 = smov (!%p517_p5, %s2950_s18), 37  ;;  %s5459_s1 = sld [smem:[#allocation7_spill]] }
  0x2d   : > { %s2951_s25 = sshll.u32 %s5483_s18, 3  ;;  %s5460_s3 = sld [smem:[#allocation9_spill]] }
  0x2e   : > { %s1455_s19 = sld [smem:[#allocation2]]  ;;  %s509_s18 = sand.u32 1, %s4154_s29  }
  0x2f   : > { %v3780_v0 = vld [vmem:[%s5455_s2] sm:$0xff]   ;;  %s2949_s24 = sshll.u32 %s509_s18, 3  ;;  %s3113_s15 = sld [smem:[#allocation2 + $0x1]] }
  0x30   : > { %3308 = vmatprep.subr.bf16.mxu0 %v3780_v0  ;;  %v3781_v1 = vld [vmem:[%s5456_s5] sm:$0xff]   ;;  %v3782_v2 = vld [vmem:[%s5456_s5 + $0x8] sm:$0xff]   ;;  %s4795_s29 = scalar_lea.vmem [#allocation4], %s2949_s24   ;;  %s3118_s18 = sshll.u32 (%p4332_p4), %s4320_s16, 1 }
  0x31   : > { %3309 = vmatpush3.bf16.msra.mxu0 %v3780_v0  ;;  %3342 = vmatprep.subr.bf16.mxu1 %v3781_v1  ;;  %s4367_s28 = scalar_lea.vmem %s5457_s0, %s2951_s25  ;;  %v3783_v3 = vld [vmem:[%s5458_s4] sm:$0xff]   ;;  %v3784_v30 = vld [vmem:[%s5458_s4 + $0x8] sm:$0xff]   ;;  %v3785_v39 = vld [vmem:[%s5458_s4 + $0x10] sm:$0xff]   ;;  %s3146_s23 = sshll.u32 (%p4332_p4), %s4320_s16, 3 }
  0x32   : > { %3343 = vmatpush3.bf16.msra.mxu1 %v3781_v1  ;;  %v546_v4 = vld [vmem:[%s4367_s28] sm:$0xff]  ;;  %v547_v5 = vld [vmem:[%s4367_s28 + $0x8] sm:$0xff]  ;;  %v548_v6 = vld [vmem:[%s4367_s28 + $0x10] sm:$0xff]  ;;  %s4397_s22 = scalar_lea.vmem %s5459_s1, %s2951_s25  ;;  %s5017_s26 = scalar_lea.vmem (%p4332_p4), %s5446_s14, %s3146_s23  }
  0x33   : > { %3344 = vmatprep.subr.bf16.mxu1 %v3782_v2  ;;  %v4375_v7 = vpack.c.bf16 %v547_v5, %v546_v4  ;;  %v549_v8 = vld [vmem:[%s4367_s28 + $0x18] sm:$0xff]  ;;  %v550_v9 = vld [vmem:[%s4367_s28 + $0x20] sm:$0xff]  ;;  %v551_v10 = vld [vmem:[%s4367_s28 + $0x28] sm:$0xff] }
  0x34   : > { %v4380_v11 = vpack.c.bf16 %v549_v8, %v548_v6  ;;  %v4382_v12 = vpack.c.bf16 %v551_v10, %v550_v9  ;;  %v552_v13 = vld [vmem:[%s4367_s28 + $0x30] sm:$0xff]  ;;  %v553_v14 = vld [vmem:[%s4367_s28 + $0x38] sm:$0xff]  ;;  %v554_v15 = vld [vmem:[%s4367_s28 + $0x40] sm:$0xff] }
  0x35   : > { %3310 = vmatprep.mubr.msk.bf16.mxu0 %vm657_vm0, %v4375_v7  ;;  %v555_v16 = vld [vmem:[%s4367_s28 + $0x48] sm:$0xff]  ;;  %v4399_v17 = vpack.c.bf16 %v553_v14, %v552_v13  ;;  %v594_v19 = vld [vmem:[%s4397_s22] sm:$0xff]  ;;  %v596_v21 = vld [vmem:[%s4397_s22 + $0x10] sm:$0xff] }
  0x36   : > { %3345 = vmatpush3.bf16.msra.mxu1 %v3782_v2  ;;  %3311 = vmatmul.mubr.msk.bf16.vlgmr.msra.gmra.mrb[0].mxu0 %vm657_vm0, %v4380_v11  ;;  %v4401_v18 = vpack.c.bf16 %v555_v16, %v554_v15  ;;  %v595_v20 = vld [vmem:[%s4397_s22 + $0x8] sm:$0xff]  ;;  %v597_v22 = vld [vmem:[%s4397_s22 + $0x18] sm:$0xff]  ;;  %v598_v25 = vld [vmem:[%s4397_s22 + $0x20] sm:$0xff] }
  0x37   : > { %3378 = vmatprep.subr.bf16.mxu1 %v3783_v3  ;;  %3314 = vmatprep.mubr.msk.bf16.mxu0 %vm657_vm0, %v4382_v12  ;;  %v626_v23 = vpack.c.bf16 %v595_v20, %v594_v19  ;;  %v627_v24 = vpack.c.bf16 %v597_v22, %v596_v21  ;;  %v599_v26 = vld [vmem:[%s4397_s22 + $0x28] sm:$0xff]  ;;  %v556_v27 = vld [vmem:[%s4367_s28 + $0x50] sm:$0xff]  ;;  %v557_v28 = vld [vmem:[%s4367_s28 + $0x58] sm:$0xff] }
  0x38   : > { %v628_v29 = vpack.c.bf16 %v599_v26, %v598_v25  ;;  %v558_v31 = vld [vmem:[%s4367_s28 + $0x60] sm:$0xff]  ;;  %v559_v32 = vld [vmem:[%s4367_s28 + $0x68] sm:$0xff]  ;;  %v4422_v33 = vpack.c.bf16 %v557_v28, %v556_v27  ;;  %v600_v34 = vld [vmem:[%s4397_s22 + $0x30] sm:$0xff] }
  0x39   : > { %3346 = vmatprep.mubr.msk.bf16.mxu1 %vm939_vm1, %v626_v23  ;;  %v601_v35 = vld [vmem:[%s4397_s22 + $0x38] sm:$0xff]  ;;  %v4427_v36 = vpack.c.bf16 %v559_v32, %v558_v31  ;;  %v602_v37 = vld [vmem:[%s4397_s22 + $0x40] sm:$0xff]  ;;  %v603_v38 = vld [vmem:[%s4397_s22 + $0x48] sm:$0xff] }
  0x3a   : > { %3347 = vmatmul.mubr.msk.bf16.vlgmr.msra.gmra.mrb[0].mxu1 %vm939_vm1, %v627_v24  ;;  %v629_v40 = vpack.c.bf16 %v601_v35, %v600_v34  ;;  %v630_v41 = vpack.c.bf16 %v603_v38, %v602_v37  ;;  %v560_v42 = vld [vmem:[%s4367_s28 + $0x70] sm:$0xff]  ;;  %v561_v43 = vld [vmem:[%s4367_s28 + $0x78] sm:$0xff]  ;;  %v562_v44 = vld [vmem:[%s4367_s28 + $0x80] sm:$0xff] }
  0x3b   : > { %3379 = vmatpush3.bf16.msra.mxu1 %v3783_v3  ;;  %3350 = vmatprep.mubr.msk.bf16.mxu1 %vm939_vm1, %v628_v29  ;;  %v563_v45 = vld [vmem:[%s4367_s28 + $0x88] sm:$0xff]  ;;  %v4443_v46 = vpack.c.bf16 %v561_v43, %v560_v42  ;;  %v604_v47 = vld [vmem:[%s4397_s22 + $0x50] sm:$0xff]  ;;  %v605_v48 = vld [vmem:[%s4397_s22 + $0x58] sm:$0xff] }
  0x3c   : > { %3380 = vmatprep.subr.bf16.mxu1 %v3784_v30  ;;  %v4448_v49 = vpack.c.bf16 %v563_v45, %v562_v44  ;;  %v606_v50 = vld [vmem:[%s4397_s22 + $0x60] sm:$0xff]  ;;  %v607_v51 = vld [vmem:[%s4397_s22 + $0x68] sm:$0xff]  ;;  %v631_v52 = vpack.c.bf16 %v605_v48, %v604_v47  ;;  %v564_v54 = vld [vmem:[%s4367_s28 + $0x90] sm:$0xff] }
  0x3d   : > { %v632_v53 = vpack.c.bf16 %v607_v51, %v606_v50  ;;  %v565_v55 = vld [vmem:[%s4367_s28 + $0x98] sm:$0xff]  ;;  %v566_v56 = vld [vmem:[%s4367_s28 + $0xa0] sm:$0xff]  ;;  %v567_v57 = vld [vmem:[%s4367_s28 + $0xa8] sm:$0xff] }
  0x3e   : > { %3315 = vmatmul.mubr.msk.bf16.gmra.mrb[4].mxu0 %vm657_vm0, %v4399_v17  ;;  %v4461_v58 = vpack.c.bf16 %v565_v55, %v564_v54  ;;  %v608_v59 = vld [vmem:[%s4397_s22 + $0x70] sm:$0xff]  ;;  %v609_v60 = vld [vmem:[%s4397_s22 + $0x78] sm:$0xff]  ;;  %v4466_v61 = vpack.c.bf16 %v567_v57, %v566_v56  ;;  %v610_v62 = vld [vmem:[%s4397_s22 + $0x80] sm:$0xff] }
  0x3f   : > { %3318 = vmatprep.mubr.msk.bf16.mxu0 %vm657_vm0, %v4401_v18  ;;  %3381 = vmatpush3.bf16.msra.mxu1 %v3784_v30  ;;  %v611_v63 = vld [vmem:[%s4397_s22 + $0x88] sm:$0xff]  ;;  %v633_v0 = vpack.c.bf16 %v609_v60, %v608_v59  ;;  %v568_v2 = vld [vmem:[%s4367_s28 + $0xb0] sm:$0xff]  ;;  %v569_v3 = vld [vmem:[%s4367_s28 + $0xb8] sm:$0xff] }
  0x40   : > { %3382 = vmatprep.subr.bf16.mxu1 %v3785_v39  ;;  %v634_v1 = vpack.c.bf16 %v611_v63, %v610_v62  ;;  %v570_v4 = vld [vmem:[%s4367_s28 + $0xc0] sm:$0xff]  ;;  %v571_v5 = vld [vmem:[%s4367_s28 + $0xc8] sm:$0xff]  ;;  %v4479_v6 = vpack.c.bf16 %v569_v3, %v568_v2  ;;  %v612_v8 = vld [vmem:[%s4397_s22 + $0x90] sm:$0xff] }
  0x41   : > { %v613_v9 = vld [vmem:[%s4397_s22 + $0x98] sm:$0xff]  ;;  %v4484_v10 = vpack.c.bf16 %v571_v5, %v570_v4  ;;  %v614_v13 = vld [vmem:[%s4397_s22 + $0xa0] sm:$0xff]  ;;  %v615_v14 = vld [vmem:[%s4397_s22 + $0xa8] sm:$0xff] }
  0x42   : > { %3351 = vmatmul.mubr.msk.bf16.gmra.mrb[4].mxu1 %vm939_vm1, %v629_v40  ;;  %v635_v15 = vpack.c.bf16 %v613_v9, %v612_v8  ;;  %v636_v16 = vpack.c.bf16 %v615_v14, %v614_v13  ;;  %v572_v19 = vld [vmem:[%s4367_s28 + $0xd0] sm:$0xff]  ;;  %v573_v20 = vld [vmem:[%s4367_s28 + $0xd8] sm:$0xff]  ;;  %v574_v21 = vld [vmem:[%s4367_s28 + $0xe0] sm:$0xff] }
  0x43   : > { %3354 = vmatprep.mubr.msk.bf16.mxu1 %vm939_vm1, %v630_v41  ;;  %3383 = vmatpush3.bf16.msra.mxu1 %v3785_v39  ;;  %v575_v22 = vld [vmem:[%s4367_s28 + $0xe8] sm:$0xff]  ;;  %v4497_v23 = vpack.c.bf16 %v573_v20, %v572_v19  ;;  %v616_v24 = vld [vmem:[%s4397_s22 + $0xb0] sm:$0xff]  ;;  %v617_v25 = vld [vmem:[%s4397_s22 + $0xb8] sm:$0xff] }
  0x44   : > { %v4502_v26 = vpack.c.bf16 %v575_v22, %v574_v21  ;;  %v637_v27 = vpack.c.bf16 %v617_v25, %v616_v24  ;;  %v576_v28 = vld [vmem:[%s4367_s28 + $0xf0] sm:$0xff]  ;;  %v577_v29 = vld [vmem:[%s4367_s28 + $0xf8] sm:$0xff]  ;;  %v618_v31 = vld [vmem:[%s4397_s22 + $0xc0] sm:$0xff] }
  0x45   : > { %v4511_v30 = vpack.c.bf16 %v577_v29, %v576_v28  ;;  %v619_v32 = vld [vmem:[%s4397_s22 + $0xc8] sm:$0xff]  ;;  %v620_v35 = vld [vmem:[%s4397_s22 + $0xd0] sm:$0xff]  ;;  %v621_v37 = vld [vmem:[%s4397_s22 + $0xd8] sm:$0xff] }
  0x46   : > { %3319 = vmatmul.mubr.msk.bf16.gmra.mrb[8].mxu0 %vm657_vm0, %v4422_v33  ;;  %v638_v34 = vpack.c.bf16 %v619_v32, %v618_v31  ;;  %v639_v38 = vpack.c.bf16 %v621_v37, %v620_v35  ;;  %v622_v39 = vld [vmem:[%s4397_s22 + $0xe0] sm:$0xff]  ;;  %v623_v40 = vld [vmem:[%s4397_s22 + $0xe8] sm:$0xff]  ;;  %v624_v42 = vld [vmem:[%s4397_s22 + $0xf0] sm:$0xff] }
  0x47   : > { %3322 = vmatprep.mubr.msk.bf16.mxu0 %vm657_vm0, %v4427_v36  ;;  %v640_v41 = vpack.c.bf16 %v623_v40, %v622_v39  ;;  %v625_v43 = vld [vmem:[%s4397_s22 + $0xf8] sm:$0xff]  ;;  %v4533_v47 = vld [vmem:[%s5460_s3] ss:$0 sm:$0xff]  ;;  %s2378_s22 = ssub.s32 (%p4332_p4), 3, %s3118_s18 }
  0x48   : > { %v641_v44 = vpack.c.bf16 %v625_v43, %v624_v42  ;;  %v3786_v45 = vld [vmem:[%s5458_s4 + $0x18] sm:$0xff]   ;;  %p2379_p6 = scmp.lt.s32.totalorder (%p4332_p4), %s2378_s22, 2 }
  0x49   : > { %3384 = vmatprep.subr.bf16.mxu1 %v3786_v45 }
  0x4a   : > { %3355 = vmatmul.mubr.msk.bf16.gmra.mrb[8].mxu1 %vm939_vm1, %v631_v52 }
  0x4b   : > { %3358 = vmatprep.mubr.msk.bf16.mxu1 %vm939_vm1, %v632_v53  ;;  %3385 = vmatpush3.bf16.msra.mxu1 %v3786_v45 }
  0x4e   : > { %3323 = vmatmul.mubr.msk.bf16.gmra.mrb[12].mxu0 %vm657_vm0, %v4443_v46 }
  0x4f   : > { %3326 = vmatprep.mubr.msk.bf16.mxu0 %vm657_vm0, %v4448_v49 }
  0x52   : > { %3359 = vmatmul.mubr.msk.bf16.gmra.mrb[12].mxu1 %vm939_vm1, %v633_v0 }
  0x53   : > { %3362 = vmatprep.mubr.msk.bf16.mxu1 %vm939_vm1, %v634_v1 }
  0x56   : > { %3327 = vmatmul.mubr.msk.bf16.gmra.mrb[16].mxu0 %vm657_vm0, %v4461_v58 }
  0x57   : > { %3330 = vmatprep.mubr.msk.bf16.mxu0 %vm657_vm0, %v4466_v61 }
  0x5a   : > { %3363 = vmatmul.mubr.msk.bf16.gmra.mrb[16].mxu1 %vm939_vm1, %v635_v15 }
  0x5b   : > { %3366 = vmatprep.mubr.msk.bf16.mxu1 %vm939_vm1, %v636_v16 }
  0x5e   : > { %3331 = vmatmul.mubr.msk.bf16.gmra.mrb[20].mxu0 %vm657_vm0, %v4479_v6 }
  0x5f   : > { %3334 = vmatprep.mubr.msk.bf16.mxu0 %vm657_vm0, %v4484_v10 }
  0x62   : > { %3367 = vmatmul.mubr.msk.bf16.gmra.mrb[20].mxu1 %vm939_vm1, %v637_v27 }
  0x63   : > { %3370 = vmatprep.mubr.msk.bf16.mxu1 %vm939_vm1, %v638_v34 }
  0x66   : > { %3335 = vmatmul.mubr.msk.bf16.gmra.mrb[24].mxu0 %vm657_vm0, %v4497_v23 }
  0x67   : > { %3338 = vmatprep.mubr.msk.bf16.mxu0 %vm657_vm0, %v4502_v26 }
  0x6a   : > { %3371 = vmatmul.mubr.msk.bf16.gmra.mrb[24].mxu1 %vm939_vm1, %v639_v38 }
  0x6b   : > { %3374 = vmatprep.mubr.msk.bf16.mxu1 %vm939_vm1, %v640_v41 }
  0x6e   : > { %3339 = vmatmul.mubr.msk.bf16.gmra.mrb[28].mxu0 %vm657_vm0, %v4511_v30 }
  0x72   : > { %3375 = vmatmul.mubr.msk.bf16.gmra.mrb[28].mxu1 %vm939_vm1, %v641_v44 }
 0x109   : > { %v3312_v48 = vpop.f32.mrb[0].mxu0 }
 0x10a   : > { %v749_v50 = vadd.f32 %v3312_v48, %v4533_v47  ;;  %v740_v51 = vpop.f32.mrb[1].mxu0 }
 0x10b   : > { %v741_v52 = vadd.f32 %v4533_v47, %v740_v51  ;;  %v3313_v53 = vpop.f32.mrb[2].mxu0 }
 0x10c   : > { %3789 = vtanh.f32 %v749_v50  ;;  %v752_v54 = vadd.f32 %v3313_v53, %v4533_v47  ;;  %v743_v55 = vpop.f32.mrb[3].mxu0 }
 0x10d   : > { %3791 = vtanh.f32 %v741_v52  ;;  %v744_v56 = vadd.f32 %v4533_v47, %v743_v55 }
 0x10e   : > { %3793 = vtanh.f32 %v752_v54 }
 0x10f   : > { %3795 = vtanh.f32 %v744_v56 }
 0x111   : > { %v3316_v57 = vpop.f32.mrb[4].mxu0 }
 0x112   : > { %v765_v59 = vadd.f32 %v3316_v57, %v4533_v47  ;;  %v756_v60 = vpop.f32.mrb[5].mxu0 }
 0x113   : > { %v757_v62 = vadd.f32 %v4533_v47, %v756_v60  ;;  %v3317_v63 = vpop.f32.mrb[6].mxu0 }
 0x114   : > { %3797 = vtanh.f32 %v765_v59  ;;  %v768_v0 = vadd.f32 %v3317_v63, %v4533_v47  ;;  %v759_v1 = vpop.f32.mrb[7].mxu0 }
 0x115   : > { %3799 = vtanh.f32 %v757_v62  ;;  %v760_v2 = vadd.f32 %v4533_v47, %v759_v1 }
 0x116   : > { %v3790_v3 = vpop.eup %3789  ;;  %3801 = vtanh.f32 %v768_v0 }
 0x117   : > { %v3792_v4 = vpop.eup %3791  ;;  %3803 = vtanh.f32 %v760_v2 }
 0x118   : > { %v3794_v5 = vpop.eup %3793 }
 0x119   : > { %v3796_v8 = vpop.eup %3795  ;;  %v900_v9 = vpack.c.bf16 %v3794_v5, %v3790_v3  ;;  %v3320_v13 = vpop.f32.mrb[8].mxu0 }
 0x11a   : > { %v781_v14 = vadd.f32 %v3320_v13, %v4533_v47  ;;  %v772_v15 = vpop.f32.mrb[9].mxu0  ;;  %v899_v16 = vpack.c.bf16 %v3796_v8, %v3792_v4 }
 0x11b   : > { %v773_v19 = vadd.f32 %v4533_v47, %v772_v15  ;;  %v3321_v20 = vpop.f32.mrb[10].mxu0 }
 0x11c   : > { %3805 = vtanh.f32 %v781_v14  ;;  %v784_v21 = vadd.f32 %v3321_v20, %v4533_v47  ;;  %v775_v22 = vpop.f32.mrb[11].mxu0  ;;  %3386 = vmatprep.mubr.msk.bf16.mxu1 %vm1173_vm2, %v899_v16 }
 0x11d   : > { %3807 = vtanh.f32 %v773_v19  ;;  %v776_v24 = vadd.f32 %v4533_v47, %v775_v22  ;;  %3387 = vmatmul.mubr.msk.bf16.vlgmr.msra.gmra.mrb[0].mxu1 %vm1173_vm2, %v900_v9 }
 0x11e   : > { %v3798_v25 = vpop.eup %3797  ;;  %3809 = vtanh.f32 %v784_v21 }
 0x11f   : > { %v3800_v27 = vpop.eup %3799  ;;  %3811 = vtanh.f32 %v776_v24 }
 0x120   : > { %v3802_v28 = vpop.eup %3801 }
 0x121   : > { %v3804_v29 = vpop.eup %3803  ;;  %v3324_v31 = vpop.f32.mrb[12].mxu0  ;;  %v902_v32 = vpack.c.bf16 %v3802_v28, %v3798_v25 }
 0x122   : > { %v797_v34 = vadd.f32 %v3324_v31, %v4533_v47  ;;  %v788_v35 = vpop.f32.mrb[13].mxu0  ;;  %v901_v37 = vpack.c.bf16 %v3804_v29, %v3800_v27 }
 0x123   : > { %v789_v38 = vadd.f32 %v4533_v47, %v788_v35  ;;  %v3325_v39 = vpop.f32.mrb[14].mxu0 }
 0x124   : > { %3813 = vtanh.f32 %v797_v34  ;;  %v800_v40 = vadd.f32 %v3325_v39, %v4533_v47  ;;  %v791_v41 = vpop.f32.mrb[15].mxu0  ;;  %3390 = vmatprep.mubr.msk.bf16.mxu1 %vm1173_vm2, %v901_v37 }
 0x125   : > { %3815 = vtanh.f32 %v789_v38  ;;  %v792_v42 = vadd.f32 %v4533_v47, %v791_v41  ;;  %3391 = vmatmul.mubr.msk.bf16.gmra.mrb[4].mxu1 %vm1173_vm2, %v902_v32 }
 0x126   : > { %v3806_v43 = vpop.eup %3805  ;;  %3817 = vtanh.f32 %v800_v40 }
 0x127   : > { %v3808_v44 = vpop.eup %3807  ;;  %3819 = vtanh.f32 %v792_v42 }
 0x128   : > { %v3810_v45 = vpop.eup %3809 }
 0x129   : > { %v3812_v48 = vpop.eup %3811  ;;  %v3328_v50 = vpop.f32.mrb[16].mxu0  ;;  %v904_v51 = vpack.c.bf16 %v3810_v45, %v3806_v43 }
 0x12a   : > { %v813_v52 = vadd.f32 %v3328_v50, %v4533_v47  ;;  %v804_v53 = vpop.f32.mrb[17].mxu0  ;;  %v903_v54 = vpack.c.bf16 %v3812_v48, %v3808_v44 }
 0x12b   : > { %v805_v55 = vadd.f32 %v4533_v47, %v804_v53  ;;  %v3329_v56 = vpop.f32.mrb[18].mxu0 }
 0x12c   : > { %3821 = vtanh.f32 %v813_v52  ;;  %v816_v57 = vadd.f32 %v3329_v56, %v4533_v47  ;;  %v807_v59 = vpop.f32.mrb[19].mxu0  ;;  %3394 = vmatprep.mubr.msk.bf16.mxu1 %vm1173_vm2, %v903_v54 }
 0x12d   : > { %3823 = vtanh.f32 %v805_v55  ;;  %v808_v60 = vadd.f32 %v4533_v47, %v807_v59  ;;  %3395 = vmatmul.mubr.msk.bf16.gmra.mrb[8].mxu1 %vm1173_vm2, %v904_v51 }
 0x12e   : > { %v3814_v62 = vpop.eup %3813  ;;  %3825 = vtanh.f32 %v816_v57 }
 0x12f   : > { %v3816_v63 = vpop.eup %3815  ;;  %3827 = vtanh.f32 %v808_v60 }
 0x130   : > { %v3818_v0 = vpop.eup %3817 }
 0x131   : > { %v3820_v1 = vpop.eup %3819  ;;  %v3332_v2 = vpop.f32.mrb[20].mxu0  ;;  %v906_v3 = vpack.c.bf16 %v3818_v0, %v3814_v62 }
 0x132   : > { %v829_v4 = vadd.f32 %v3332_v2, %v4533_v47  ;;  %v820_v5 = vpop.f32.mrb[21].mxu0  ;;  %v905_v8 = vpack.c.bf16 %v3820_v1, %v3816_v63 }
 0x133   : > { %v821_v9 = vadd.f32 %v4533_v47, %v820_v5  ;;  %v3333_v13 = vpop.f32.mrb[22].mxu0  ;;  %v4593_v5 = vld [vmem:[%s5438_s6] ss:$0 sm:$0xff] }
 0x134   : > { %3829 = vtanh.f32 %v829_v4  ;;  %v832_v14 = vadd.f32 %v3333_v13, %v4533_v47  ;;  %v823_v15 = vpop.f32.mrb[23].mxu0  ;;  %3398 = vmatprep.mubr.msk.bf16.mxu1 %vm1173_vm2, %v905_v8  ;;  %v4586_v4 = vld [vmem:[%s5439_s7] sm:$0x1] }
 0x135   : > { %3831 = vtanh.f32 %v821_v9  ;;  %v824_v16 = vadd.f32 %v4533_v47, %v823_v15  ;;  %3399 = vmatmul.mubr.msk.bf16.gmra.mrb[12].mxu1 %vm1173_vm2, %v906_v3  ;;  %3238 = vmatprep.mubr.msk.f32.mxu0 %vm1173_vm2, %v4586_v4 }
 0x136   : > { %v3822_v19 = vpop.eup %3821  ;;  %3833 = vtanh.f32 %v832_v14 }
 0x137   : > { %v3824_v20 = vpop.eup %3823  ;;  %3835 = vtanh.f32 %v824_v16 }
 0x138   : > { %v3826_v21 = vpop.eup %3825 }
 0x139   : > { %v3828_v22 = vpop.eup %3827  ;;  %v3336_v24 = vpop.f32.mrb[24].mxu0  ;;  %v908_v25 = vpack.c.bf16 %v3826_v21, %v3822_v19 }
 0x13a   : > { %v845_v27 = vadd.f32 %v3336_v24, %v4533_v47  ;;  %v836_v28 = vpop.f32.mrb[25].mxu0  ;;  %v907_v29 = vpack.c.bf16 %v3828_v22, %v3824_v20 }
 0x13b   : > { %v837_v31 = vadd.f32 %v4533_v47, %v836_v28  ;;  %v3337_v32 = vpop.f32.mrb[26].mxu0 }
 0x13c   : > { %3837 = vtanh.f32 %v845_v27  ;;  %v848_v34 = vadd.f32 %v3337_v32, %v4533_v47  ;;  %v839_v35 = vpop.f32.mrb[27].mxu0  ;;  %3402 = vmatprep.mubr.msk.bf16.mxu1 %vm1173_vm2, %v907_v29 }
 0x13d   : > { %3839 = vtanh.f32 %v837_v31  ;;  %v840_v37 = vadd.f32 %v4533_v47, %v839_v35  ;;  %3403 = vmatmul.mubr.msk.bf16.gmra.mrb[16].mxu1 %vm1173_vm2, %v908_v25 }
 0x13e   : > { %v3830_v38 = vpop.eup %3829  ;;  %3841 = vtanh.f32 %v848_v34 }
 0x13f   : > { %v3832_v39 = vpop.eup %3831  ;;  %3843 = vtanh.f32 %v840_v37 }
 0x140   : > { %v3834_v40 = vpop.eup %3833 }
 0x141   : > { %v3836_v41 = vpop.eup %3835  ;;  %v3340_v42 = vpop.f32.mrb[28].mxu0  ;;  %v910_v43 = vpack.c.bf16 %v3834_v40, %v3830_v38 }
 0x142   : > { %v861_v44 = vadd.f32 %v3340_v42, %v4533_v47  ;;  %v852_v45 = vpop.f32.mrb[29].mxu0  ;;  %v909_v48 = vpack.c.bf16 %v3836_v41, %v3832_v39 }
 0x143   : > { %v853_v50 = vadd.f32 %v4533_v47, %v852_v45  ;;  %v3341_v51 = vpop.f32.mrb[30].mxu0 }
 0x144   : > { %3845 = vtanh.f32 %v861_v44  ;;  %v864_v52 = vadd.f32 %v3341_v51, %v4533_v47  ;;  %v855_v53 = vpop.f32.mrb[31].mxu0  ;;  %3406 = vmatprep.mubr.msk.bf16.mxu1 %vm1173_vm2, %v909_v48 }
 0x145   : > { %3847 = vtanh.f32 %v853_v50  ;;  %v856_v54 = vadd.f32 %v4533_v47, %v855_v53  ;;  %3407 = vmatmul.mubr.msk.bf16.gmra.mrb[20].mxu1 %vm1173_vm2, %v910_v43 }
 0x146   : > { %v3838_v55 = vpop.eup %3837  ;;  %3849 = vtanh.f32 %v864_v52 }
 0x147   : > { %v3840_v56 = vpop.eup %3839  ;;  %3851 = vtanh.f32 %v856_v54 }
 0x148   : > { %v3842_v57 = vpop.eup %3841 }
 0x149   : > { %v3844_v59 = vpop.eup %3843  ;;  %v912_v60 = vpack.c.bf16 %v3842_v57, %v3838_v55 }
 0x14a   : > { %v911_v62 = vpack.c.bf16 %v3844_v59, %v3840_v56 }
 0x14c   : > { %3410 = vmatprep.mubr.msk.bf16.mxu1 %vm1173_vm2, %v911_v62 }
 0x14d   : > { %3411 = vmatmul.mubr.msk.bf16.gmra.mrb[24].mxu1 %vm1173_vm2, %v912_v60 }
 0x14e   : > { %v3846_v63 = vpop.eup %3845 }
 0x14f   : > { %v3848_v0 = vpop.eup %3847 }
 0x150   : > { %v3850_v1 = vpop.eup %3849 }
 0x151   : > { %v3852_v2 = vpop.eup %3851  ;;  %v914_v3 = vpack.c.bf16 %v3850_v1, %v3846_v63 }
 0x152   : > { %v913_v47 = vpack.c.bf16 %v3852_v2, %v3848_v0 }
 0x154   : > { %3414 = vmatprep.mubr.msk.bf16.mxu1 %vm1173_vm2, %v913_v47 }
 0x155   : > { %3415 = vmatmul.mubr.msk.bf16.gmra.mrb[28].mxu1 %vm1173_vm2, %v914_v3 }
 0x1f0   : > { %v3388_v8 = vpop.f32.mrb[0].mxu1 }
 0x1f1   : > { %v1392_v9 = vadd.f32 %v3388_v8, %v4593_v5  ;;  %v1256_v13 = vpop.f32.mrb[1].mxu1 }
 0x1f2   : > { %v1390_v14 = vadd.f32 %v4593_v5, %v1256_v13  ;;  %v3389_v15 = vpop.f32.mrb[2].mxu1 }
 0x1f3   : > { %3853 = vtanh.f32 %v1392_v9  ;;  %v1393_v16 = vadd.f32 %v3389_v15, %v4593_v5  ;;  %v1259_v19 = vpop.f32.mrb[3].mxu1 }
 0x1f4   : > { %3855 = vtanh.f32 %v1390_v14  ;;  %v1391_v20 = vadd.f32 %v4593_v5, %v1259_v19 }
 0x1f5   : > { %3857 = vtanh.f32 %v1393_v16 }
 0x1f6   : > { %3859 = vtanh.f32 %v1391_v20 }
 0x1f8   : > { %v3392_v21 = vpop.f32.mrb[4].mxu1 }
 0x1f9   : > { %v1396_v22 = vadd.f32 %v3392_v21, %v4593_v5  ;;  %v1272_v24 = vpop.f32.mrb[5].mxu1 }
 0x1fa   : > { %v1394_v25 = vadd.f32 %v4593_v5, %v1272_v24  ;;  %v3393_v27 = vpop.f32.mrb[6].mxu1 }
 0x1fb   : > { %3861 = vtanh.f32 %v1396_v22  ;;  %v1397_v28 = vadd.f32 %v3393_v27, %v4593_v5  ;;  %v1275_v29 = vpop.f32.mrb[7].mxu1 }
 0x1fc   : > { %3863 = vtanh.f32 %v1394_v25  ;;  %v1395_v31 = vadd.f32 %v4593_v5, %v1275_v29 }
 0x1fd   : > { %v4603_v32 = vpop.eup %3853  ;;  %3865 = vtanh.f32 %v1397_v28 }
 0x1fe   : > { %v4605_v34 = vpop.eup %3855  ;;  %3867 = vtanh.f32 %v1395_v31 }
 0x1ff   : > { %v4607_v35 = vpop.eup %3857 }
 0x200   : > { %v4609_v37 = vpop.eup %3859  ;;  %v3396_v38 = vpop.f32.mrb[8].mxu1  ;;  %v3495_v39 = vpack.c.bf16 %v4607_v35, %v4603_v32 }
 0x201   : > { %v1400_v40 = vadd.f32 %v3396_v38, %v4593_v5  ;;  %v1288_v41 = vpop.f32.mrb[9].mxu1  ;;  %v3489_v42 = vpack.c.bf16 %v4609_v37, %v4605_v34 }
 0x202   : > { %v1398_v43 = vadd.f32 %v4593_v5, %v1288_v41  ;;  %v3397_v44 = vpop.f32.mrb[10].mxu1 }
 0x203   : > { %3869 = vtanh.f32 %v1400_v40  ;;  %v1401_v45 = vadd.f32 %v3397_v44, %v4593_v5  ;;  %v1291_v48 = vpop.f32.mrb[11].mxu1 }
 0x204   : > { %3871 = vtanh.f32 %v1398_v43  ;;  %v1399_v50 = vadd.f32 %v4593_v5, %v1291_v48 }
 0x205   : > { %v4619_v51 = vpop.eup %3861  ;;  %3873 = vtanh.f32 %v1401_v45 }
 0x206   : > { %v4621_v52 = vpop.eup %3863  ;;  %3875 = vtanh.f32 %v1399_v50 }
 0x207   : > { %v4623_v53 = vpop.eup %3865 }
 0x208   : > { %v4625_v54 = vpop.eup %3867  ;;  %v3400_v55 = vpop.f32.mrb[12].mxu1  ;;  %v3507_v56 = vpack.c.bf16 %v4623_v53, %v4619_v51  ;;  %v3787_v51 = vld [vmem:[%s5440_s8] sm:$0xff]  }
 0x209   : > { %v1404_v57 = vadd.f32 %v3400_v55, %v4593_v5  ;;  %v1304_v59 = vpop.f32.mrb[13].mxu1  ;;  %v3501_v60 = vpack.c.bf16 %v4625_v54, %v4621_v52  ;;  %v3788_v52 = vld [vmem:[%s5442_s10] sm:$0xff]  }
 0x20a   : > { %v1402_v62 = vadd.f32 %v4593_v5, %v1304_v59  ;;  %v3401_v63 = vpop.f32.mrb[14].mxu1 }
 0x20b   : > { %3877 = vtanh.f32 %v1404_v57  ;;  %v1405_v0 = vadd.f32 %v3401_v63, %v4593_v5  ;;  %v1307_v1 = vpop.f32.mrb[15].mxu1 }
 0x20c   : > { %3879 = vtanh.f32 %v1402_v62  ;;  %v1403_v2 = vadd.f32 %v4593_v5, %v1307_v1 }
 0x20d   : > { %v4635_v3 = vpop.eup %3869  ;;  %3881 = vtanh.f32 %v1405_v0 }
 0x20e   : > { %v4637_v47 = vpop.eup %3871  ;;  %3883 = vtanh.f32 %v1403_v2 }
 0x20f   : > { %v4639_v8 = vpop.eup %3873 }
 0x210   : > { %v4641_v9 = vpop.eup %3875  ;;  %v3404_v13 = vpop.f32.mrb[16].mxu1  ;;  %v3519_v14 = vpack.c.bf16 %v4639_v8, %v4635_v3 }
 0x211   : > { %v1408_v15 = vadd.f32 %v3404_v13, %v4593_v5  ;;  %v1320_v16 = vpop.f32.mrb[17].mxu1  ;;  %v3513_v19 = vpack.c.bf16 %v4641_v9, %v4637_v47 }
 0x212   : > { %v1406_v20 = vadd.f32 %v4593_v5, %v1320_v16  ;;  %v3405_v21 = vpop.f32.mrb[18].mxu1 }
 0x213   : > { %3885 = vtanh.f32 %v1408_v15  ;;  %v1409_v22 = vadd.f32 %v3405_v21, %v4593_v5  ;;  %v1323_v24 = vpop.f32.mrb[19].mxu1 }
 0x214   : > { %3887 = vtanh.f32 %v1406_v20  ;;  %v1407_v25 = vadd.f32 %v4593_v5, %v1323_v24 }
 0x215   : > { %v4651_v27 = vpop.eup %3877  ;;  %3889 = vtanh.f32 %v1409_v22 }
 0x216   : > { %v4653_v28 = vpop.eup %3879  ;;  %3891 = vtanh.f32 %v1407_v25 }
 0x217   : > { %v4655_v29 = vpop.eup %3881 }
 0x218   : > { %v4657_v31 = vpop.eup %3883  ;;  %v3408_v38 = vpop.f32.mrb[20].mxu1  ;;  %v3531_v40 = vpack.c.bf16 %v4655_v29, %v4651_v27 }
 0x219   : > { %v1412_v41 = vadd.f32 %v3408_v38, %v4593_v5  ;;  %v1336_v43 = vpop.f32.mrb[21].mxu1  ;;  %v3525_v44 = vpack.c.bf16 %v4657_v31, %v4653_v28 }
 0x21a   : > { %v1410_v45 = vadd.f32 %v4593_v5, %v1336_v43  ;;  %v3409_v48 = vpop.f32.mrb[22].mxu1 }
 0x21b   : > { %3893 = vtanh.f32 %v1412_v41  ;;  %v1413_v50 = vadd.f32 %v3409_v48, %v4593_v5  ;;  %v1339_v55 = vpop.f32.mrb[23].mxu1 }
 0x21c   : > { %3895 = vtanh.f32 %v1410_v45  ;;  %v1411_v57 = vadd.f32 %v4593_v5, %v1339_v55 }
 0x21d   : > { %v3886_v59 = vpop.eup %3885  ;;  %3897 = vtanh.f32 %v1413_v50 }
 0x21e   : > { %v3888_v62 = vpop.eup %3887  ;;  %3899 = vtanh.f32 %v1411_v57 }
 0x21f   : > { %v3890_v63 = vpop.eup %3889 }
 0x220   : > { %v3892_v0 = vpop.eup %3891  ;;  %v3412_v1 = vpop.f32.mrb[24].mxu1  ;;  %v3492_v13 = vpack.c.bf16 %v3890_v63, %v3886_v59 }
 0x221   : > { %v1416_v15 = vadd.f32 %v3412_v1, %v4593_v5  ;;  %v1352_v16 = vpop.f32.mrb[25].mxu1  ;;  %v3486_v20 = vpack.c.bf16 %v3892_v0, %v3888_v62 }
 0x222   : > { %v1414_v21 = vadd.f32 %v4593_v5, %v1352_v16  ;;  %v3413_v22 = vpop.f32.mrb[26].mxu1 }
 0x223   : > { %3901 = vtanh.f32 %v1416_v15  ;;  %v1417_v24 = vadd.f32 %v3413_v22, %v4593_v5  ;;  %v1355_v25 = vpop.f32.mrb[27].mxu1  ;;  %3488 = vmatprep.subr.msk.bf16.mxu0 %vm4669_vm3, %v3486_v20 }
 0x224   : > { %3903 = vtanh.f32 %v1414_v21  ;;  %v1415_v38 = vadd.f32 %v4593_v5, %v1355_v25  ;;  %3491 = vmatpush3.bf16.xpose.msk.msra.mxu0 %vm4669_vm3, %v3489_v42 }
 0x225   : > { %v3894_v41 = vpop.eup %3893  ;;  %3905 = vtanh.f32 %v1417_v24  ;;  %3494 = vmatprep.subr.msk.bf16.mxu0 %vm4669_vm3, %v3492_v13 }
 0x226   : > { %v3896_v43 = vpop.eup %3895  ;;  %3907 = vtanh.f32 %v1415_v38 }
 0x227   : > { %v3898_v45 = vpop.eup %3897 }
 0x228   : > { %v3900_v48 = vpop.eup %3899  ;;  %v3416_v50 = vpop.f32.mrb[28].mxu1  ;;  %v3504_v55 = vpack.c.bf16 %v3898_v45, %v3894_v41 }
 0x229   : > { %v1420_v57 = vadd.f32 %v3416_v50, %v4593_v5  ;;  %v1368_v59 = vpop.f32.mrb[29].mxu1  ;;  %v3498_v62 = vpack.c.bf16 %v3900_v48, %v3896_v43 }
 0x22a   : > { %v1418_v34 = vadd.f32 %v4593_v5, %v1368_v59  ;;  %v3417_v37 = vpop.f32.mrb[30].mxu1 }
 0x22b   : > { %3909 = vtanh.f32 %v1420_v57  ;;  %v1421_v42 = vadd.f32 %v3417_v37, %v4593_v5  ;;  %v1371_v63 = vpop.f32.mrb[31].mxu1 }
 0x22c   : > { %3911 = vtanh.f32 %v1418_v34  ;;  %v1419_v0 = vadd.f32 %v4593_v5, %v1371_v63  ;;  %3497 = vmatpush3.bf16.xpose.msk.msra.mxu0 %vm4669_vm3, %v3495_v39 }
 0x22d   : > { %v3902_v1 = vpop.eup %3901  ;;  %3913 = vtanh.f32 %v1421_v42  ;;  %3500 = vmatprep.subr.msk.bf16.mxu0 %vm4669_vm3, %v3498_v62 }
 0x22e   : > { %v3904_v13 = vpop.eup %3903  ;;  %3915 = vtanh.f32 %v1419_v0 }
 0x22f   : > { %v3906_v15 = vpop.eup %3905 }
 0x230   : > { %v3908_v16 = vpop.eup %3907  ;;  %v3516_v20 = vpack.c.bf16 %v3906_v15, %v3902_v1 }
 0x231   : > { %v3510_v21 = vpack.c.bf16 %v3908_v16, %v3904_v13 }
 0x234   : > { %3503 = vmatpush3.bf16.xpose.msk.msra.mxu0 %vm4669_vm3, %v3501_v60 }
 0x235   : > { %v3910_v5 = vpop.eup %3909  ;;  %3506 = vmatprep.subr.msk.bf16.mxu0 %vm4669_vm3, %v3504_v55 }
 0x236   : > { %v3912_v32 = vpop.eup %3911 }
 0x237   : > { %v3914_v35 = vpop.eup %3913 }
 0x238   : > { %v3916_v39 = vpop.eup %3915  ;;  %v3528_v22 = vpack.c.bf16 %v3914_v35, %v3910_v5 }
 0x239   : > { %v3522_v24 = vpack.c.bf16 %v3916_v39, %v3912_v32 }
 0x23c   : > { %3509 = vmatpush3.bf16.xpose.msk.msra.mxu0 %vm4669_vm3, %v3507_v56 }
 0x23d   : > { %3512 = vmatprep.subr.msk.bf16.mxu0 %vm4669_vm3, %v3510_v21 }
 0x244   : > { %3515 = vmatpush3.bf16.xpose.msk.msra.mxu0 %vm4669_vm3, %v3513_v19 }
 0x245   : > { %3518 = vmatprep.subr.msk.bf16.mxu0 %vm4669_vm3, %v3516_v20 }
 0x24c   : > { %3521 = vmatpush3.bf16.xpose.msk.msra.mxu0 %vm4669_vm3, %v3519_v14 }
 0x24d   : > { %3524 = vmatprep.subr.msk.bf16.mxu0 %vm4669_vm3, %v3522_v24 }
 0x254   : > { %3527 = vmatpush3.bf16.xpose.msk.msra.mxu0 %vm4669_vm3, %v3525_v44 }
 0x255   : > { %3530 = vmatprep.subr.msk.bf16.mxu0 %vm4669_vm3, %v3528_v22 }
 0x25c   : > { %3533 = vmatpush3.bf16.xpose.msk.msra.mxu0 %vm4669_vm3, %v3531_v40 }
 0x25d   : > { %3418 = vmatprep.subr.bf16.mxu0 %v3787_v51 }
 0x263   : > { %3239 = vmatmul.mubr.msk.f32.vlgmr.msra.gmra.mrb[32].mxu0 %vm1173_vm2, %v4586_v4 }
 0x264   : > { %3419 = vmatpush3.bf16.msra.mxu0 %v3787_v51  ;;  %3420 = vmatprep.mubr.msk.bf16.mxu0 %vm657_vm0, %v4375_v7  ;;  %v4229_v7 = vmov 1966171168  }
 0x265   : > { %3452 = vmatprep.subr.bf16.mxu0 %v3788_v52 }
 0x267   : > { %3421 = vmatmul.mubr.msk.bf16.vlgmr.msra.gmra.mrb[36].mxu0 %vm657_vm0, %v4380_v11  ;;  %v2310_v11 = vunpack.c.l.s4 %v4229_v7 }
 0x268   : > { %3424 = vmatprep.mubr.msk.bf16.mxu0 %vm657_vm0, %v4382_v12  ;;  %3453 = vmatpush3.bf16.msra.mxu0 %v3788_v52  ;;  %v2312_v12 = vlaneseq }
 0x26a   : > { %vm4788_vm4 = vcmp.lt.s32.totalorder %v2312_v12, 256 }
 0x26f   : > { %3425 = vmatmul.mubr.msk.bf16.gmra.mrb[40].mxu0 %vm657_vm0, %v4399_v17  ;;  %v1456_v17 = vstv %s1455_s19  ;;  %s3114_s19 = sld [smem:[#allocation2 + $0x2]] }
 0x270   : > { %3428 = vmatprep.mubr.msk.bf16.mxu0 %vm657_vm0, %v4401_v18  ;;  %v2311_v18 = vunpack.c.0.s8 %v2310_v11 }
 0x277   : > { %3429 = vmatmul.mubr.msk.bf16.gmra.mrb[44].mxu0 %vm657_vm0, %v4422_v33  ;;  %v2313_v33 = vshrl.u32 %v2312_v12, 7 }
 0x278   : > { %3432 = vmatprep.mubr.msk.bf16.mxu0 %vm657_vm0, %v4427_v36 }
 0x27f   : > { %3433 = vmatmul.mubr.msk.bf16.gmra.mrb[48].mxu0 %vm657_vm0, %v4443_v46 }
 0x280   : > { %3436 = vmatprep.mubr.msk.bf16.mxu0 %vm657_vm0, %v4448_v49 }
 0x287   : > { %3437 = vmatmul.mubr.msk.bf16.gmra.mrb[52].mxu0 %vm657_vm0, %v4461_v58 }
 0x288   : > { %3440 = vmatprep.mubr.msk.bf16.mxu0 %vm657_vm0, %v4466_v61  ;;  %v4778_v61 = vsub.s32 %v2311_v18, %v2313_v33 }
 0x28f   : > { %3441 = vmatmul.mubr.msk.bf16.gmra.mrb[56].mxu0 %vm657_vm0, %v4479_v6  ;;  %v4783_v6 = vld [vmem:[%s5441_s9] ss:$0 sm:$0xff] }
 0x290   : > { %3444 = vmatprep.mubr.msk.bf16.mxu0 %vm657_vm0, %v4484_v10 }
 0x297   : > { %3445 = vmatmul.mubr.msk.bf16.gmra.mrb[60].mxu0 %vm657_vm0, %v4497_v23 }
 0x298   : > { %3448 = vmatprep.mubr.msk.bf16.mxu0 %vm657_vm0, %v4502_v26 }
 0x29f   : > { %3449 = vmatmul.mubr.msk.bf16.gmra.mrb[64].mxu0 %vm657_vm0, %v4511_v30 }
 0x336   : > { %v1622_v36 = vpop.f32.mrb[32].mxu0 }
 0x337   : > { %v1623_v46 = vadd.f32 %v1622_v36, %v1456_v17  ;;  %v1624_v49 = vpop.f32.mrb[33].mxu0 }
 0x338   : > { %v1625_v58 = vadd.f32 %v1624_v49, %v1456_v17 }
 0x33a   : > { %v2308_v10 = vcombine.low %v1623_v46, %v1625_v58  ;;  %v3422_v23 = vpop.f32.mrb[36].mxu0 }
 0x33b   : > { %v1685_v26 = vadd.f32 %v3422_v23, %v4783_v6  ;;  %v1676_v30 = vpop.f32.mrb[37].mxu0 }
 0x33c   : > { %v2315_v4 = vrot.slane %v2308_v10, %v4778_v61  ;;  %v1677_v53 = vadd.f32 %v4783_v6, %v1676_v30  ;;  %v3423_v54 = vpop.f32.mrb[38].mxu0 }
 0x33d   : > { %3917 = vtanh.f32 %v1685_v26  ;;  %v1688_v60 = vadd.f32 %v3423_v54, %v4783_v6  ;;  %v1679_v3 = vpop.f32.mrb[39].mxu0 }
 0x33e   : > { %v2322_v47 = vrot.slane %v2315_v4, %v4778_v61  ;;  %3919 = vtanh.f32 %v1677_v53  ;;  %v1680_v8 = vadd.f32 %v4783_v6, %v1679_v3 }
 0x33f   : > { %3921 = vtanh.f32 %v1688_v60 }
 0x340   : > { %2328 = vst.msk [vmem:[%s4795_s29] ss:$4 sm:$0x3] %vm4788_vm4, %v2322_v47  ;;  %3923 = vtanh.f32 %v1680_v8 }
 0x342   : > { %v3426_v9 = vpop.f32.mrb[40].mxu0 }
 0x343   : > { %v1701_v14 = vadd.f32 %v3426_v9, %v4783_v6  ;;  %v1692_v19 = vpop.f32.mrb[41].mxu0 }
 0x344   : > { %v1693_v27 = vadd.f32 %v4783_v6, %v1692_v19  ;;  %v3427_v28 = vpop.f32.mrb[42].mxu0 }
 0x345   : > { %3925 = vtanh.f32 %v1701_v14  ;;  %v1704_v29 = vadd.f32 %v3427_v28, %v4783_v6  ;;  %v1695_v31 = vpop.f32.mrb[43].mxu0 }
 0x346   : > { %3927 = vtanh.f32 %v1693_v27  ;;  %v1696_v40 = vadd.f32 %v4783_v6, %v1695_v31 }
 0x347   : > { %v3918_v44 = vpop.eup %3917  ;;  %3929 = vtanh.f32 %v1704_v29 }
 0x348   : > { %v3920_v2 = vpop.eup %3919  ;;  %3931 = vtanh.f32 %v1696_v40 }
 0x349   : > { %v3922_v25 = vpop.eup %3921 }
 0x34a   : > { %v3924_v38 = vpop.eup %3923  ;;  %v1836_v41 = vpack.c.bf16 %v3922_v25, %v3918_v44  ;;  %v3430_v43 = vpop.f32.mrb[44].mxu0 }
 0x34b   : > { %v1717_v45 = vadd.f32 %v3430_v43, %v4783_v6  ;;  %v1708_v48 = vpop.f32.mrb[45].mxu0  ;;  %v1835_v50 = vpack.c.bf16 %v3924_v38, %v3920_v2 }
 0x34c   : > { %v1709_v55 = vadd.f32 %v4783_v6, %v1708_v48  ;;  %v3431_v57 = vpop.f32.mrb[46].mxu0 }
 0x34d   : > { %3933 = vtanh.f32 %v1717_v45  ;;  %v1720_v59 = vadd.f32 %v3431_v57, %v4783_v6  ;;  %v1711_v62 = vpop.f32.mrb[47].mxu0  ;;  %3454 = vmatprep.mubr.msk.bf16.mxu0 %vm657_vm0, %v1835_v50 }
 0x34e   : > { %3935 = vtanh.f32 %v1709_v55  ;;  %v1712_v34 = vadd.f32 %v4783_v6, %v1711_v62  ;;  %3455 = vmatmul.mubr.msk.bf16.vlgmr.msra.gmra.mrb[68].mxu0 %vm657_vm0, %v1836_v41 }
 0x34f   : > { %v3926_v37 = vpop.eup %3925  ;;  %3937 = vtanh.f32 %v1720_v59 }
 0x350   : > { %v3928_v42 = vpop.eup %3927  ;;  %3939 = vtanh.f32 %v1712_v34 }
 0x351   : > { %v3930_v63 = vpop.eup %3929 }
 0x352   : > { %v3932_v0 = vpop.eup %3931  ;;  %v3434_v1 = vpop.f32.mrb[48].mxu0  ;;  %v1838_v13 = vpack.c.bf16 %v3930_v63, %v3926_v37 }
 0x353   : > { %v1733_v15 = vadd.f32 %v3434_v1, %v4783_v6  ;;  %v1724_v16 = vpop.f32.mrb[49].mxu0  ;;  %v1837_v20 = vpack.c.bf16 %v3932_v0, %v3928_v42 }
 0x354   : > { %v1725_v21 = vadd.f32 %v4783_v6, %v1724_v16  ;;  %v3435_v5 = vpop.f32.mrb[50].mxu0 }
 0x355   : > { %3941 = vtanh.f32 %v1733_v15  ;;  %v1736_v32 = vadd.f32 %v3435_v5, %v4783_v6  ;;  %v1727_v35 = vpop.f32.mrb[51].mxu0  ;;  %3458 = vmatprep.mubr.msk.bf16.mxu0 %vm657_vm0, %v1837_v20 }
 0x356   : > { %3943 = vtanh.f32 %v1725_v21  ;;  %v1728_v39 = vadd.f32 %v4783_v6, %v1727_v35  ;;  %3459 = vmatmul.mubr.msk.bf16.gmra.mrb[72].mxu0 %vm657_vm0, %v1838_v13 }
 0x357   : > { %v3934_v22 = vpop.eup %3933  ;;  %3945 = vtanh.f32 %v1736_v32 }
 0x358   : > { %v3936_v24 = vpop.eup %3935  ;;  %3947 = vtanh.f32 %v1728_v39 }
 0x359   : > { %v3938_v51 = vpop.eup %3937 }
 0x35a   : > { %v3940_v52 = vpop.eup %3939  ;;  %v3438_v7 = vpop.f32.mrb[52].mxu0  ;;  %v1840_v11 = vpack.c.bf16 %v3938_v51, %v3934_v22 }
 0x35b   : > { %v1749_v12 = vadd.f32 %v3438_v7, %v4783_v6  ;;  %v1740_v17 = vpop.f32.mrb[53].mxu0  ;;  %v1839_v18 = vpack.c.bf16 %v3940_v52, %v3936_v24 }
 0x35c   : > { %v1741_v33 = vadd.f32 %v4783_v6, %v1740_v17  ;;  %v3439_v36 = vpop.f32.mrb[54].mxu0  ;;  %v4854_v17 = vld [vmem:[%s5443_s11] ss:$0 sm:$0xff] }
 0x35d   : > { %3949 = vtanh.f32 %v1749_v12  ;;  %v1752_v46 = vadd.f32 %v3439_v36, %v4783_v6  ;;  %v1743_v49 = vpop.f32.mrb[55].mxu0  ;;  %3462 = vmatprep.mubr.msk.bf16.mxu0 %vm657_vm0, %v1839_v18 }
 0x35e   : > { %3951 = vtanh.f32 %v1741_v33  ;;  %v1744_v58 = vadd.f32 %v4783_v6, %v1743_v49  ;;  %3463 = vmatmul.mubr.msk.bf16.gmra.mrb[76].mxu0 %vm657_vm0, %v1840_v11 }
 0x35f   : > { %v3942_v10 = vpop.eup %3941  ;;  %3953 = vtanh.f32 %v1752_v46 }
 0x360   : > { %v3944_v23 = vpop.eup %3943  ;;  %3955 = vtanh.f32 %v1744_v58 }
 0x361   : > { %v3946_v26 = vpop.eup %3945 }
 0x362   : > { %v3948_v30 = vpop.eup %3947  ;;  %v3442_v4 = vpop.f32.mrb[56].mxu0  ;;  %v1842_v53 = vpack.c.bf16 %v3946_v26, %v3942_v10 }
 0x363   : > { %v1765_v54 = vadd.f32 %v3442_v4, %v4783_v6  ;;  %v1756_v60 = vpop.f32.mrb[57].mxu0  ;;  %v1841_v3 = vpack.c.bf16 %v3948_v30, %v3944_v23 }
 0x364   : > { %v1757_v47 = vadd.f32 %v4783_v6, %v1756_v60  ;;  %v3443_v8 = vpop.f32.mrb[58].mxu0 }
 0x365   : > { %3957 = vtanh.f32 %v1765_v54  ;;  %v1768_v9 = vadd.f32 %v3443_v8, %v4783_v6  ;;  %3466 = vmatprep.mubr.msk.bf16.mxu0 %vm657_vm0, %v1841_v3  ;;  %v1759_v14 = vpop.f32.mrb[59].mxu0 }
 0x366   : > { %3959 = vtanh.f32 %v1757_v47  ;;  %v1760_v19 = vadd.f32 %v4783_v6, %v1759_v14  ;;  %3467 = vmatmul.mubr.msk.bf16.gmra.mrb[80].mxu0 %vm657_vm0, %v1842_v53 }
 0x367   : > { %v3950_v27 = vpop.eup %3949  ;;  %3961 = vtanh.f32 %v1768_v9 }
 0x368   : > { %v3952_v28 = vpop.eup %3951  ;;  %3963 = vtanh.f32 %v1760_v19 }
 0x369   : > { %v3954_v29 = vpop.eup %3953 }
 0x36a   : > { %v3956_v31 = vpop.eup %3955  ;;  %v1844_v40 = vpack.c.bf16 %v3954_v29, %v3950_v27  ;;  %v3446_v44 = vpop.f32.mrb[60].mxu0 }
 0x36b   : > { %v1843_v2 = vpack.c.bf16 %v3956_v31, %v3952_v28  ;;  %v1781_v25 = vadd.f32 %v3446_v44, %v4783_v6  ;;  %v1772_v38 = vpop.f32.mrb[61].mxu0 }
 0x36c   : > { %v1773_v41 = vadd.f32 %v4783_v6, %v1772_v38  ;;  %v3447_v43 = vpop.f32.mrb[62].mxu0 }
 0x36d   : > { %3470 = vmatprep.mubr.msk.bf16.mxu0 %vm657_vm0, %v1843_v2  ;;  %3965 = vtanh.f32 %v1781_v25  ;;  %v1784_v45 = vadd.f32 %v3447_v43, %v4783_v6  ;;  %v1775_v48 = vpop.f32.mrb[63].mxu0 }
 0x36e   : > { %3471 = vmatmul.mubr.msk.bf16.gmra.mrb[84].mxu0 %vm657_vm0, %v1844_v40  ;;  %3967 = vtanh.f32 %v1773_v41  ;;  %v1776_v50 = vadd.f32 %v4783_v6, %v1775_v48 }
 0x36f   : > { %v3958_v55 = vpop.eup %3957  ;;  %3969 = vtanh.f32 %v1784_v45 }
 0x370   : > { %v3960_v57 = vpop.eup %3959  ;;  %3971 = vtanh.f32 %v1776_v50 }
 0x371   : > { %v3962_v59 = vpop.eup %3961 }
 0x372   : > { %v3964_v62 = vpop.eup %3963  ;;  %v1846_v34 = vpack.c.bf16 %v3962_v59, %v3958_v55  ;;  %v3450_v37 = vpop.f32.mrb[64].mxu0 }
 0x373   : > { %v1845_v42 = vpack.c.bf16 %v3964_v62, %v3960_v57  ;;  %v1797_v63 = vadd.f32 %v3450_v37, %v4783_v6  ;;  %v1788_v0 = vpop.f32.mrb[65].mxu0 }
 0x374   : > { %v1789_v1 = vadd.f32 %v4783_v6, %v1788_v0  ;;  %v3451_v13 = vpop.f32.mrb[66].mxu0 }
 0x375   : > { %3474 = vmatprep.mubr.msk.bf16.mxu0 %vm657_vm0, %v1845_v42  ;;  %3973 = vtanh.f32 %v1797_v63  ;;  %v1800_v15 = vadd.f32 %v3451_v13, %v4783_v6  ;;  %v1791_v16 = vpop.f32.mrb[67].mxu0 }
 0x376   : > { %3475 = vmatmul.mubr.msk.bf16.gmra.mrb[88].mxu0 %vm657_vm0, %v1846_v34  ;;  %3975 = vtanh.f32 %v1789_v1  ;;  %v1792_v20 = vadd.f32 %v4783_v6, %v1791_v16  ;;  %v4847_v6 = vld [vmem:[%s5444_s12] sm:$0x3] }
 0x377   : > { %v3966_v21 = vpop.eup %3965  ;;  %3977 = vtanh.f32 %v1800_v15  ;;  %3306 = vmatprep.mubr.msk.f32.mxu1 %vm657_vm0, %v4847_v6 }
 0x378   : > { %v3968_v5 = vpop.eup %3967  ;;  %3979 = vtanh.f32 %v1792_v20 }
 0x379   : > { %v3970_v32 = vpop.eup %3969 }
 0x37a   : > { %v3972_v35 = vpop.eup %3971  ;;  %v1848_v39 = vpack.c.bf16 %v3970_v32, %v3966_v21 }
 0x37b   : > { %v1847_v22 = vpack.c.bf16 %v3972_v35, %v3968_v5 }
 0x37d   : > { %3478 = vmatprep.mubr.msk.bf16.mxu0 %vm657_vm0, %v1847_v22 }
 0x37e   : > { %3479 = vmatmul.mubr.msk.bf16.gmra.mrb[92].mxu0 %vm657_vm0, %v1848_v39 }
 0x37f   : > { %v3974_v24 = vpop.eup %3973 }
 0x380   : > { %v3976_v51 = vpop.eup %3975 }
 0x381   : > { %v3978_v52 = vpop.eup %3977 }
 0x382   : > { %v3980_v7 = vpop.eup %3979  ;;  %v1850_v11 = vpack.c.bf16 %v3978_v52, %v3974_v24 }
 0x383   : > { %v1849_v12 = vpack.c.bf16 %v3980_v7, %v3976_v51 }
 0x385   : > { %3482 = vmatprep.mubr.msk.bf16.mxu0 %vm657_vm0, %v1849_v12 }
 0x386   : > { %3483 = vmatmul.mubr.msk.bf16.gmra.mrb[96].mxu0 %vm657_vm0, %v1850_v11 }
 0x421   : > { %v3456_v18 = vpop.f32.mrb[68].mxu0 }
 0x422   : > { %v1957_v33 = vadd.f32 %v3456_v18, %v4854_v17  ;;  %v1948_v36 = vpop.f32.mrb[69].mxu0 }
 0x423   : > { %v1949_v46 = vadd.f32 %v4854_v17, %v1948_v36  ;;  %v3457_v49 = vpop.f32.mrb[70].mxu0 }
 0x424   : > { %3981 = vtanh.f32 %v1957_v33  ;;  %v1960_v58 = vadd.f32 %v3457_v49, %v4854_v17  ;;  %v1951_v10 = vpop.f32.mrb[71].mxu0 }
 0x425   : > { %3983 = vtanh.f32 %v1949_v46  ;;  %v1952_v23 = vadd.f32 %v4854_v17, %v1951_v10 }
 0x426   : > { %3985 = vtanh.f32 %v1960_v58 }
 0x427   : > { %3987 = vtanh.f32 %v1952_v23 }
 0x429   : > { %v3460_v26 = vpop.f32.mrb[72].mxu0 }
 0x42a   : > { %v1973_v30 = vadd.f32 %v3460_v26, %v4854_v17  ;;  %v1964_v4 = vpop.f32.mrb[73].mxu0 }
 0x42b   : > { %v1965_v53 = vadd.f32 %v4854_v17, %v1964_v4  ;;  %v3461_v54 = vpop.f32.mrb[74].mxu0 }
 0x42c   : > { %3989 = vtanh.f32 %v1973_v30  ;;  %v1976_v60 = vadd.f32 %v3461_v54, %v4854_v17  ;;  %v1967_v3 = vpop.f32.mrb[75].mxu0 }
 0x42d   : > { %3991 = vtanh.f32 %v1965_v53  ;;  %v1968_v47 = vadd.f32 %v4854_v17, %v1967_v3 }
 0x42e   : > { %v4864_v8 = vpop.eup %3981  ;;  %3993 = vtanh.f32 %v1976_v60 }
 0x42f   : > { %v4866_v9 = vpop.eup %3983  ;;  %3995 = vtanh.f32 %v1968_v47 }
 0x430   : > { %v4868_v14 = vpop.eup %3985 }
 0x431   : > { %v4870_v19 = vpop.eup %3987  ;;  %v3464_v27 = vpop.f32.mrb[76].mxu0  ;;  %v3543_v28 = vpack.c.bf16 %v4868_v14, %v4864_v8 }
 0x432   : > { %v1989_v29 = vadd.f32 %v3464_v27, %v4854_v17  ;;  %v1980_v31 = vpop.f32.mrb[77].mxu0  ;;  %v3537_v40 = vpack.c.bf16 %v4870_v19, %v4866_v9 }
 0x433   : > { %v1981_v44 = vadd.f32 %v4854_v17, %v1980_v31  ;;  %v3465_v2 = vpop.f32.mrb[78].mxu0 }
 0x434   : > { %3997 = vtanh.f32 %v1989_v29  ;;  %v1992_v25 = vadd.f32 %v3465_v2, %v4854_v17  ;;  %v1983_v38 = vpop.f32.mrb[79].mxu0 }
 0x435   : > { %3999 = vtanh.f32 %v1981_v44  ;;  %v1984_v41 = vadd.f32 %v4854_v17, %v1983_v38 }
 0x436   : > { %v4880_v43 = vpop.eup %3989  ;;  %4001 = vtanh.f32 %v1992_v25 }
 0x437   : > { %v4882_v45 = vpop.eup %3991  ;;  %4003 = vtanh.f32 %v1984_v41 }
 0x438   : > { %v4884_v48 = vpop.eup %3993 }
 0x439   : > { %v4886_v50 = vpop.eup %3995  ;;  %v3468_v55 = vpop.f32.mrb[80].mxu0  ;;  %v3555_v57 = vpack.c.bf16 %v4884_v48, %v4880_v43  ;;  %v2279_v43 = vstv %s3113_s15 }
 0x43a   : > { %v2005_v59 = vadd.f32 %v3468_v55, %v4854_v17  ;;  %v1996_v62 = vpop.f32.mrb[81].mxu0  ;;  %v3549_v34 = vpack.c.bf16 %v4886_v50, %v4882_v45  ;;  %v2285_v45 = vstv %s3114_s19 }
 0x43b   : > { %v1997_v37 = vadd.f32 %v4854_v17, %v1996_v62  ;;  %v3469_v42 = vpop.f32.mrb[82].mxu0 }
 0x43c   : > { %4005 = vtanh.f32 %v2005_v59  ;;  %v2008_v63 = vadd.f32 %v3469_v42, %v4854_v17  ;;  %v1999_v0 = vpop.f32.mrb[83].mxu0 }
 0x43d   : > { %4007 = vtanh.f32 %v1997_v37  ;;  %v2000_v1 = vadd.f32 %v4854_v17, %v1999_v0 }
 0x43e   : > { %v4896_v13 = vpop.eup %3997  ;;  %4009 = vtanh.f32 %v2008_v63 }
 0x43f   : > { %v4898_v15 = vpop.eup %3999  ;;  %4011 = vtanh.f32 %v2000_v1 }
 0x440   : > { %v4900_v16 = vpop.eup %4001 }
 0x441   : > { %v4902_v20 = vpop.eup %4003  ;;  %v3472_v21 = vpop.f32.mrb[84].mxu0  ;;  %v3567_v5 = vpack.c.bf16 %v4900_v16, %v4896_v13 }
 0x442   : > { %v2021_v32 = vadd.f32 %v3472_v21, %v4854_v17  ;;  %v2012_v35 = vpop.f32.mrb[85].mxu0  ;;  %v3561_v39 = vpack.c.bf16 %v4902_v20, %v4898_v15 }
 0x443   : > { %v2013_v22 = vadd.f32 %v4854_v17, %v2012_v35  ;;  %v3473_v24 = vpop.f32.mrb[86].mxu0 }
 0x444   : > { %4013 = vtanh.f32 %v2021_v32  ;;  %v2024_v51 = vadd.f32 %v3473_v24, %v4854_v17  ;;  %v2015_v52 = vpop.f32.mrb[87].mxu0 }
 0x445   : > { %4015 = vtanh.f32 %v2013_v22  ;;  %v2016_v7 = vadd.f32 %v4854_v17, %v2015_v52 }
 0x446   : > { %v4912_v11 = vpop.eup %4005  ;;  %4017 = vtanh.f32 %v2024_v51 }
 0x447   : > { %v4914_v12 = vpop.eup %4007  ;;  %4019 = vtanh.f32 %v2016_v7 }
 0x448   : > { %v4916_v18 = vpop.eup %4009 }
 0x449   : > { %v4918_v33 = vpop.eup %4011  ;;  %v3476_v36 = vpop.f32.mrb[88].mxu0  ;;  %v3579_v46 = vpack.c.bf16 %v4916_v18, %v4912_v11 }
 0x44a   : > { %v2037_v49 = vadd.f32 %v3476_v36, %v4854_v17  ;;  %v2028_v58 = vpop.f32.mrb[89].mxu0  ;;  %v3573_v10 = vpack.c.bf16 %v4918_v33, %v4914_v12 }
 0x44b   : > { %v2029_v23 = vadd.f32 %v4854_v17, %v2028_v58  ;;  %v3477_v26 = vpop.f32.mrb[90].mxu0 }
 0x44c   : > { %4021 = vtanh.f32 %v2037_v49  ;;  %v2040_v30 = vadd.f32 %v3477_v26, %v4854_v17  ;;  %v2031_v4 = vpop.f32.mrb[91].mxu0 }
 0x44d   : > { %4023 = vtanh.f32 %v2029_v23  ;;  %v2032_v53 = vadd.f32 %v4854_v17, %v2031_v4 }
 0x44e   : > { %v4014_v54 = vpop.eup %4013  ;;  %4025 = vtanh.f32 %v2040_v30 }
 0x44f   : > { %v4016_v60 = vpop.eup %4015  ;;  %4027 = vtanh.f32 %v2032_v53 }
 0x450   : > { %v4018_v3 = vpop.eup %4017 }
 0x451   : > { %v4020_v47 = vpop.eup %4019  ;;  %v3540_v29 = vpack.c.bf16 %v4018_v3, %v4014_v54  ;;  %v3480_v31 = vpop.f32.mrb[92].mxu0 }
 0x452   : > { %v3534_v44 = vpack.c.bf16 %v4020_v47, %v4016_v60  ;;  %v2053_v2 = vadd.f32 %v3480_v31, %v4854_v17  ;;  %v2044_v25 = vpop.f32.mrb[93].mxu0 }
 0x453   : > { %v2045_v38 = vadd.f32 %v4854_v17, %v2044_v25  ;;  %v3481_v41 = vpop.f32.mrb[94].mxu0 }
 0x454   : > { %3536 = vmatprep.subr.msk.bf16.mxu1 %vm4930_vm5, %v3534_v44  ;;  %4029 = vtanh.f32 %v2053_v2  ;;  %v2056_v55 = vadd.f32 %v3481_v41, %v4854_v17  ;;  %v2047_v59 = vpop.f32.mrb[95].mxu0 }
 0x455   : > { %3539 = vmatpush3.bf16.xpose.msk.msra.mxu1 %vm4930_vm5, %v3537_v40  ;;  %4031 = vtanh.f32 %v2045_v38  ;;  %v2048_v62 = vadd.f32 %v4854_v17, %v2047_v59 }
 0x456   : > { %v4022_v37 = vpop.eup %4021  ;;  %3542 = vmatprep.subr.msk.bf16.mxu1 %vm4930_vm5, %v3540_v29  ;;  %4033 = vtanh.f32 %v2056_v55 }
 0x457   : > { %v4024_v42 = vpop.eup %4023  ;;  %4035 = vtanh.f32 %v2048_v62 }
 0x458   : > { %v4026_v63 = vpop.eup %4025 }
 0x459   : > { %v4028_v0 = vpop.eup %4027  ;;  %v3552_v1 = vpack.c.bf16 %v4026_v63, %v4022_v37  ;;  %v3484_v21 = vpop.f32.mrb[96].mxu0 }
 0x45a   : > { %v3546_v32 = vpack.c.bf16 %v4028_v0, %v4024_v42  ;;  %v2069_v9 = vadd.f32 %v3484_v21, %v4854_v17  ;;  %v2060_v19 = vpop.f32.mrb[97].mxu0 }
 0x45b   : > { %v2061_v40 = vadd.f32 %v4854_v17, %v2060_v19  ;;  %v3485_v35 = vpop.f32.mrb[98].mxu0 }
 0x45c   : > { %4037 = vtanh.f32 %v2069_v9  ;;  %v2072_v22 = vadd.f32 %v3485_v35, %v4854_v17  ;;  %v2063_v24 = vpop.f32.mrb[99].mxu0 }
 0x45d   : > { %3545 = vmatpush3.bf16.xpose.msk.msra.mxu1 %vm4930_vm5, %v3543_v28  ;;  %4039 = vtanh.f32 %v2061_v40  ;;  %v2064_v51 = vadd.f32 %v4854_v17, %v2063_v24 }
 0x45e   : > { %v4030_v52 = vpop.eup %4029  ;;  %3548 = vmatprep.subr.msk.bf16.mxu1 %vm4930_vm5, %v3546_v32  ;;  %4041 = vtanh.f32 %v2072_v22 }
 0x45f   : > { %v4032_v7 = vpop.eup %4031  ;;  %4043 = vtanh.f32 %v2064_v51 }
 0x460   : > { %v4034_v36 = vpop.eup %4033 }
 0x461   : > { %v4036_v49 = vpop.eup %4035  ;;  %v3564_v58 = vpack.c.bf16 %v4034_v36, %v4030_v52 }
 0x462   : > { %v3558_v23 = vpack.c.bf16 %v4036_v49, %v4032_v7 }
 0x465   : > { %3551 = vmatpush3.bf16.xpose.msk.msra.mxu1 %vm4930_vm5, %v3549_v34 }
 0x466   : > { %v4038_v8 = vpop.eup %4037  ;;  %3554 = vmatprep.subr.msk.bf16.mxu1 %vm4930_vm5, %v3552_v1 }
 0x467   : > { %v4040_v17 = vpop.eup %4039 }
 0x468   : > { %v4042_v14 = vpop.eup %4041 }
 0x469   : > { %v4044_v28 = vpop.eup %4043  ;;  %v3576_v26 = vpack.c.bf16 %v4042_v14, %v4038_v8 }
 0x46a   : > { %v3570_v30 = vpack.c.bf16 %v4044_v28, %v4040_v17 }
 0x46d   : > { %3557 = vmatpush3.bf16.xpose.msk.msra.mxu1 %vm4930_vm5, %v3555_v57 }
 0x46e   : > { %3560 = vmatprep.subr.msk.bf16.mxu1 %vm4930_vm5, %v3558_v23 }
 0x475   : > { %3563 = vmatpush3.bf16.xpose.msk.msra.mxu1 %vm4930_vm5, %v3561_v39 }
 0x476   : > { %3566 = vmatprep.subr.msk.bf16.mxu1 %vm4930_vm5, %v3564_v58 }
 0x47d   : > { %3569 = vmatpush3.bf16.xpose.msk.msra.mxu1 %vm4930_vm5, %v3567_v5 }
 0x47e   : > { %3572 = vmatprep.subr.msk.bf16.mxu1 %vm4930_vm5, %v3570_v30 }
 0x485   : > { %3575 = vmatpush3.bf16.xpose.msk.msra.mxu1 %vm4930_vm5, %v3573_v10 }
 0x486   : > { %3578 = vmatprep.subr.msk.bf16.mxu1 %vm4930_vm5, %v3576_v26 }
 0x48d   : > { %3581 = vmatpush3.bf16.xpose.msk.msra.mxu1 %vm4930_vm5, %v3579_v46 }
 0x494   : > { %3307 = vmatmul.mubr.msk.f32.vlgmr.msra.gmra.mrb[32].mxu1 %vm657_vm0, %v4847_v6 }
 0x567   : > { %v2273_v48 = vpop.f32.mrb[32].mxu1 }
 0x568   : > { %v2275_v50 = vpop.f32.mrb[33].mxu1  ;;  %v2280_v57 = vadd.f32 %v2279_v43, %v2273_v48  ;;  %v2286_v34 = vadd.f32 %v2285_v45, %v2273_v48 }
 0x569   : > { %v2281_v13 = vadd.f32 %v2279_v43, %v2275_v50  ;;  %v2287_v15 = vadd.f32 %v2285_v45, %v2275_v50 }
 0x56a   : > { %4045 = vtanh.f32 %v2280_v57  ;;  %v2290_v16 = vand.u32 2147483647, %v2286_v34  ;;  %v2288_v27 = vmax.f32 %v2286_v34, 0.0 }
 0x56b   : > { %4047 = vtanh.f32 %v2281_v13  ;;  %v2291_v20 = vand.u32 2147483647, %v2287_v15  ;;  %v2289_v31 = vmax.f32 %v2287_v15, 0.0 }
 0x56c   : > { %v2292_v5 = vsub.f32 0.0, %v2290_v16 }
 0x56d   : > { %v2293_v39 = vsub.f32 0.0, %v2291_v20 }
 0x56e   : > { %v2294_v11 = vmul.f32 1.442695, %v2292_v5 }
 0x56f   : > { %v2296_v12 = vmul.f32 1.442695, %v2293_v39 }
 0x570   : > { %4049 = vpow2.f32 %v2294_v11 }
 0x571   : > { %4051 = vpow2.f32 %v2296_v12 }
 0x574   : > { %v4046_v6 = vpop.eup %4045 }
 0x575   : > { %v4048_v18 = vpop.eup %4047 }
 0x576   : > { %v2331_v33 = vcombine.low %v4046_v6, %v4048_v18 }
 0x578   : > { %v2338_v46 = vrot.slane %v2331_v33, %v4778_v61 }
 0x57a   : > { %v4050_v10 = vpop.eup %4049  ;;  %v2345_v4 = vrot.slane %v2338_v46, %v4778_v61 }
 0x57b   : > { %v4052_v53 = vpop.eup %4051  ;;  %v2298_v54 = vadd.f32 1.0, %v4050_v10 }
 0x57c   : > { %v2299_v60 = vadd.f32 1.0, %v4052_v53  ;;  %3115 = vst.msk [vmem:[%s4795_s29 + $0x1] ss:$4 sm:$0x3] %vm4788_vm4, %v2345_v4 }
 0x57d   : > { %4053 = vlog2.f32 %v2298_v54 }
 0x57e   : > { %4055 = vlog2.f32 %v2299_v60 }
 0x587   : > { %v4054_v3 = vpop.eup %4053 }
 0x588   : > { %v4056_v47 = vpop.eup %4055  ;;  %v2301_v29 = vmul.f32 0.6931472, %v4054_v3 }
 0x589   : > { %v2303_v44 = vmul.f32 0.6931472, %v4056_v47 }
 0x58a   : > { %v2304_v2 = vadd.f32 %v2301_v29, %v2288_v27 }
 0x58b   : > { %v2305_v25 = vadd.f32 %v2303_v44, %v2289_v31 }
 0x58d   : > { %v2351_v38 = vcombine.low %v2304_v2, %v2305_v25 }
 0x58f   : > { %v2358_v41 = vrot.slane %v2351_v38, %v4778_v61  ;;  %2376 = sbr.rel (!%p4332_p4) target bundleno = 1595 (0x63b), region = 84 }
 0x591   : > { %v2359_v55 = vcombine.high %v2358_v41, %v2358_v41 }
 0x593   : > { %v2366_v59 = vrot.slane %v2359_v55, %v4778_v61 }
 0x595   : > { %3116 = vst.msk [vmem:[%s4795_s29 + $0x2] ss:$4 sm:$0x3] %vm4788_vm4, %v2366_v59 }
 0x596   : > { %s5485_s22 = smov (!%p2379_p6, %s2378_s22), 2 }
 0x597   : > { %s3119_s27 = sshll.u32 %s5485_s22, 6  ;;  %s5019_s28 = sshll.u32 %s5485_s22, 2 }
 0x598   : > { %p3123_p7 = scmp.eq.s32.totalorder %s3119_s27, 0 }
 0x599   : > { %p2389_p8 = scmp.lt.u32.totalorder (!%p3123_p7), %s5019_s28, 8 }
 0x59a   : > { %2388 = sbr.rel (%p3123_p7) target bundleno = 1595 (0x63b), region = 88 }
 0x5a1   : > { %2392 = sbr.rel (%p2389_p8) target bundleno = 1586 (0x632), region = 92  ;;  %s5023_s21 = sand.u32 (!%p2389_p8), 7, %s5019_s28  }
 0x5a2   : > { %p2408_p4 = scmp.eq.s32.totalorder (!%p2389_p8), %s5023_s21, 0  ;;  %p3124_p9 = scmp.ne.s32.totalorder (!%p2389_p8), %s5023_s21, 0 }
 0x5a8   : > { %2411 = sbr.rel (%p3124_p9) target bundleno = 1515 (0x5eb), region = 107  ;;  %s2412_s16 = sshrl.u32 (!%p3124_p9), %s5019_s28, 3 }
 0x5a9   : > { %s5030_s15 = sshrl.u32 (!%p3124_p9), %s2412_s16, 6 }
 0x5aa   : > { %p3125_p10 = scmp.le.s32.totalorder (!%p3124_p9), %s5030_s15, 0 }
 0x5af   : > { %2856 = sbr.rel (%p3125_p10) target bundleno = 1495 (0x5d7), region = 194  ;;  %s5467_s19 = smov (!%p3125_p10), %s5017_s26 }
 0x5b0   : > { %s5468_s18 = smov (!%p3125_p10), %s4795_s29  ;;  %s5039_s23 = smov (!%p3125_p10), 0  }
 0x5b1   : > { %s5041_s22 = smov (!%p3125_p10), 0  }
 0x5b6 LB: >> { %v2425_v61 = vld [vmem:[%s4170_s18] sm:$0xff]  ;;  %v2427_v56 = vld [vmem:[%s4170_s18 + $0x8] sm:$0xff]  ;;  %v2429_v62 = vld [vmem:[%s4170_s18 + $0x10] sm:$0xff]  ;;  %s2553_s24 = sadd.s32 1, %s4174_s23  ;;  %s2419_s22 = sadd.s32 1, %s4178_s22   ;;  %s4178_s22 = sphi %s5041_s22, %s2419_s22   ;;  %s4174_s23 = sphi %s5039_s23, %s5471_s23   ;;  %s4170_s18 = sphi %s5468_s18, %s5470_s18   ;;  %s4166_s19 = sphi %s5467_s19, %s5469_s19  }
 0x5b7   : >> { %2426 = vst [vmem:[%s4166_s19] sm:$0xff] %v2425_v61  ;;  %2428 = vst [vmem:[%s4166_s19 + $0x8] sm:$0xff] %v2427_v56  ;;  %v2431_v37 = vld [vmem:[%s4170_s18 + $0x18] sm:$0xff]  ;;  %v2433_v42 = vld [vmem:[%s4170_s18 + $0x20] sm:$0xff]  ;;  %p2554_p11 = scmp.ge.s32.totalorder %s2553_s24, %s5030_s15  ;;  %p2418_p12 = scmp.ge.s32.totalorder %s2419_s22, %s5030_s15 }
 0x5b8   : >> { %2430 = vst [vmem:[%s4166_s19 + $0x10] sm:$0xff] %v2429_v62  ;;  %v2435_v63 = vld [vmem:[%s4170_s18 + $0x28] sm:$0xff]  ;;  %2432 = vst [vmem:[%s4166_s19 + $0x18] sm:$0xff] %v2431_v37  ;;  %v2437_v0 = vld [vmem:[%s4170_s18 + $0x30] sm:$0xff] }
 0x5b9   : >> { %2434 = vst [vmem:[%s4166_s19 + $0x20] sm:$0xff] %v2433_v42  ;;  %2436 = vst [vmem:[%s4166_s19 + $0x28] sm:$0xff] %v2435_v63  ;;  %v2439_v1 = vld [vmem:[%s4170_s18 + $0x38] sm:$0xff]  ;;  %v2441_v21 = vld [vmem:[%s4170_s18 + $0x40] sm:$0xff]  ;;  %s5487_s24 = smov (%p2554_p11, %s2553_s24), 0 }
 0x5ba   : >> { %2438 = vst [vmem:[%s4166_s19 + $0x30] sm:$0xff] %v2437_v0  ;;  %2440 = vst [vmem:[%s4166_s19 + $0x38] sm:$0xff] %v2439_v1  ;;  %v2443_v32 = vld [vmem:[%s4170_s18 + $0x48] sm:$0xff]  ;;  %v2445_v9 = vld [vmem:[%s4170_s18 + $0x50] sm:$0xff]  ;;  %s3126_s25 = sshll.u32 %s5487_s24, 9 }
 0x5bb   : >> { %2442 = vst [vmem:[%s4166_s19 + $0x40] sm:$0xff] %v2441_v21  ;;  %v2447_v19 = vld [vmem:[%s4170_s18 + $0x58] sm:$0xff]  ;;  %2444 = vst [vmem:[%s4166_s19 + $0x48] sm:$0xff] %v2443_v32  ;;  %v2449_v40 = vld [vmem:[%s4170_s18 + $0x60] sm:$0xff]  ;;  %s5097_s27 = scalar_lea.vmem %s4795_s29, %s3126_s25 [#allocation4]   ;;  %s5100_s23 = scalar_lea.vmem %s5017_s26, %s3126_s25  }
 0x5bc   : >> { %2446 = vst [vmem:[%s4166_s19 + $0x50] sm:$0xff] %v2445_v9  ;;  %2448 = vst [vmem:[%s4166_s19 + $0x58] sm:$0xff] %v2447_v19  ;;  %v2451_v35 = vld [vmem:[%s4170_s18 + $0x68] sm:$0xff]  ;;  %v2453_v22 = vld [vmem:[%s4170_s18 + $0x70] sm:$0xff] }
 0x5bd   : >> { %2450 = vst [vmem:[%s4166_s19 + $0x60] sm:$0xff] %v2449_v40  ;;  %2452 = vst [vmem:[%s4166_s19 + $0x68] sm:$0xff] %v2451_v35  ;;  %v2455_v24 = vld [vmem:[%s4170_s18 + $0x78] sm:$0xff]  ;;  %v2457_v51 = vld [vmem:[%s4170_s18 + $0x80] sm:$0xff] }
 0x5be   : >> { %2454 = vst [vmem:[%s4166_s19 + $0x70] sm:$0xff] %v2453_v22  ;;  %v2459_v52 = vld [vmem:[%s4170_s18 + $0x88] sm:$0xff]  ;;  %2456 = vst [vmem:[%s4166_s19 + $0x78] sm:$0xff] %v2455_v24  ;;  %v2461_v7 = vld [vmem:[%s4170_s18 + $0x90] sm:$0xff] }
 0x5bf   : >> { %2458 = vst [vmem:[%s4166_s19 + $0x80] sm:$0xff] %v2457_v51  ;;  %2460 = vst [vmem:[%s4166_s19 + $0x88] sm:$0xff] %v2459_v52  ;;  %v2463_v36 = vld [vmem:[%s4170_s18 + $0x98] sm:$0xff]  ;;  %v2465_v49 = vld [vmem:[%s4170_s18 + $0xa0] sm:$0xff] }
 0x5c0   : >> { %2462 = vst [vmem:[%s4166_s19 + $0x90] sm:$0xff] %v2461_v7  ;;  %2464 = vst [vmem:[%s4166_s19 + $0x98] sm:$0xff] %v2463_v36  ;;  %v2467_v58 = vld [vmem:[%s4170_s18 + $0xa8] sm:$0xff]  ;;  %v2469_v23 = vld [vmem:[%s4170_s18 + $0xb0] sm:$0xff] }
 0x5c1   : >> { %2466 = vst [vmem:[%s4166_s19 + $0xa0] sm:$0xff] %v2465_v49  ;;  %v2471_v8 = vld [vmem:[%s4170_s18 + $0xb8] sm:$0xff]  ;;  %2468 = vst [vmem:[%s4166_s19 + $0xa8] sm:$0xff] %v2467_v58  ;;  %v2473_v17 = vld [vmem:[%s4170_s18 + $0xc0] sm:$0xff] }
 0x5c2   : >> { %2470 = vst [vmem:[%s4166_s19 + $0xb0] sm:$0xff] %v2469_v23  ;;  %2472 = vst [vmem:[%s4166_s19 + $0xb8] sm:$0xff] %v2471_v8  ;;  %v2475_v14 = vld [vmem:[%s4170_s18 + $0xc8] sm:$0xff]  ;;  %v2477_v28 = vld [vmem:[%s4170_s18 + $0xd0] sm:$0xff] }
 0x5c3   : >> { %2474 = vst [vmem:[%s4166_s19 + $0xc0] sm:$0xff] %v2473_v17  ;;  %2476 = vst [vmem:[%s4166_s19 + $0xc8] sm:$0xff] %v2475_v14  ;;  %v2479_v26 = vld [vmem:[%s4170_s18 + $0xd8] sm:$0xff]  ;;  %v2481_v30 = vld [vmem:[%s4170_s18 + $0xe0] sm:$0xff] }
 0x5c4   : >> { %2478 = vst [vmem:[%s4166_s19 + $0xd0] sm:$0xff] %v2477_v28  ;;  %v2483_v43 = vld [vmem:[%s4170_s18 + $0xe8] sm:$0xff]  ;;  %2480 = vst [vmem:[%s4166_s19 + $0xd8] sm:$0xff] %v2479_v26  ;;  %v2485_v45 = vld [vmem:[%s4170_s18 + $0xf0] sm:$0xff] }
 0x5c5   : >> { %2482 = vst [vmem:[%s4166_s19 + $0xe0] sm:$0xff] %v2481_v30  ;;  %2484 = vst [vmem:[%s4166_s19 + $0xe8] sm:$0xff] %v2483_v43  ;;  %v2487_v48 = vld [vmem:[%s4170_s18 + $0xf8] sm:$0xff]  ;;  %v2489_v50 = vld [vmem:[%s4170_s18 + $0x100] sm:$0xff] }
 0x5c6   : >> { %2486 = vst [vmem:[%s4166_s19 + $0xf0] sm:$0xff] %v2485_v45  ;;  %2488 = vst [vmem:[%s4166_s19 + $0xf8] sm:$0xff] %v2487_v48  ;;  %v2491_v57 = vld [vmem:[%s4170_s18 + $0x108] sm:$0xff]  ;;  %v2493_v34 = vld [vmem:[%s4170_s18 + $0x110] sm:$0xff] }
 0x5c7   : >> { %2490 = vst [vmem:[%s4166_s19 + $0x100] sm:$0xff] %v2489_v50  ;;  %v2495_v13 = vld [vmem:[%s4170_s18 + $0x118] sm:$0xff]  ;;  %2492 = vst [vmem:[%s4166_s19 + $0x108] sm:$0xff] %v2491_v57  ;;  %v2497_v15 = vld [vmem:[%s4170_s18 + $0x120] sm:$0xff] }
 0x5c8   : >> { %2494 = vst [vmem:[%s4166_s19 + $0x110] sm:$0xff] %v2493_v34  ;;  %2496 = vst [vmem:[%s4166_s19 + $0x118] sm:$0xff] %v2495_v13  ;;  %v2499_v16 = vld [vmem:[%s4170_s18 + $0x128] sm:$0xff]  ;;  %v2501_v20 = vld [vmem:[%s4170_s18 + $0x130] sm:$0xff] }
 0x5c9   : >> { %2498 = vst [vmem:[%s4166_s19 + $0x120] sm:$0xff] %v2497_v15  ;;  %2500 = vst [vmem:[%s4166_s19 + $0x128] sm:$0xff] %v2499_v16  ;;  %v2503_v5 = vld [vmem:[%s4170_s18 + $0x138] sm:$0xff]  ;;  %v2505_v39 = vld [vmem:[%s4170_s18 + $0x140] sm:$0xff] }
 0x5ca   : >> { %2502 = vst [vmem:[%s4166_s19 + $0x130] sm:$0xff] %v2501_v20  ;;  %v2507_v11 = vld [vmem:[%s4170_s18 + $0x148] sm:$0xff]  ;;  %2504 = vst [vmem:[%s4166_s19 + $0x138] sm:$0xff] %v2503_v5  ;;  %v2509_v12 = vld [vmem:[%s4170_s18 + $0x150] sm:$0xff] }
 0x5cb   : >> { %2506 = vst [vmem:[%s4166_s19 + $0x140] sm:$0xff] %v2505_v39  ;;  %2508 = vst [vmem:[%s4166_s19 + $0x148] sm:$0xff] %v2507_v11  ;;  %v2511_v6 = vld [vmem:[%s4170_s18 + $0x158] sm:$0xff]  ;;  %v2513_v18 = vld [vmem:[%s4170_s18 + $0x160] sm:$0xff] }
 0x5cc   : >> { %2510 = vst [vmem:[%s4166_s19 + $0x150] sm:$0xff] %v2509_v12  ;;  %2512 = vst [vmem:[%s4166_s19 + $0x158] sm:$0xff] %v2511_v6  ;;  %v2515_v33 = vld [vmem:[%s4170_s18 + $0x168] sm:$0xff]  ;;  %v2517_v46 = vld [vmem:[%s4170_s18 + $0x170] sm:$0xff] }
 0x5cd   : >> { %2514 = vst [vmem:[%s4166_s19 + $0x160] sm:$0xff] %v2513_v18  ;;  %v2519_v10 = vld [vmem:[%s4170_s18 + $0x178] sm:$0xff]  ;;  %2516 = vst [vmem:[%s4166_s19 + $0x168] sm:$0xff] %v2515_v33  ;;  %v2521_v4 = vld [vmem:[%s4170_s18 + $0x180] sm:$0xff] }
 0x5ce   : >> { %2518 = vst [vmem:[%s4166_s19 + $0x170] sm:$0xff] %v2517_v46  ;;  %2520 = vst [vmem:[%s4166_s19 + $0x178] sm:$0xff] %v2519_v10  ;;  %v2523_v53 = vld [vmem:[%s4170_s18 + $0x188] sm:$0xff]  ;;  %v2525_v54 = vld [vmem:[%s4170_s18 + $0x190] sm:$0xff] }
 0x5cf   : >> { %2522 = vst [vmem:[%s4166_s19 + $0x180] sm:$0xff] %v2521_v4  ;;  %2524 = vst [vmem:[%s4166_s19 + $0x188] sm:$0xff] %v2523_v53  ;;  %v2527_v60 = vld [vmem:[%s4170_s18 + $0x198] sm:$0xff]  ;;  %v2529_v3 = vld [vmem:[%s4170_s18 + $0x1a0] sm:$0xff] }
 0x5d0   : >> { %2526 = vst [vmem:[%s4166_s19 + $0x190] sm:$0xff] %v2525_v54  ;;  %v2531_v47 = vld [vmem:[%s4170_s18 + $0x1a8] sm:$0xff]  ;;  %2528 = vst [vmem:[%s4166_s19 + $0x198] sm:$0xff] %v2527_v60  ;;  %v2533_v27 = vld [vmem:[%s4170_s18 + $0x1b0] sm:$0xff]  ;;  %2421 = sbr.rel (!%p2418_p12) target bundleno = 1462 (0x5b6), region = 200 }
 0x5d1   : >> { %2530 = vst [vmem:[%s4166_s19 + $0x1a0] sm:$0xff] %v2529_v3  ;;  %2532 = vst [vmem:[%s4166_s19 + $0x1a8] sm:$0xff] %v2531_v47  ;;  %v2535_v29 = vld [vmem:[%s4170_s18 + $0x1b8] sm:$0xff]  ;;  %v2537_v31 = vld [vmem:[%s4170_s18 + $0x1c0] sm:$0xff] }
 0x5d2   : >> { %2534 = vst [vmem:[%s4166_s19 + $0x1b0] sm:$0xff] %v2533_v27  ;;  %2536 = vst [vmem:[%s4166_s19 + $0x1b8] sm:$0xff] %v2535_v29  ;;  %v2539_v44 = vld [vmem:[%s4170_s18 + $0x1c8] sm:$0xff]  ;;  %v2541_v2 = vld [vmem:[%s4170_s18 + $0x1d0] sm:$0xff] }
 0x5d3   : >> { %2538 = vst [vmem:[%s4166_s19 + $0x1c0] sm:$0xff] %v2537_v31  ;;  %v2543_v25 = vld [vmem:[%s4170_s18 + $0x1d8] sm:$0xff]  ;;  %2540 = vst [vmem:[%s4166_s19 + $0x1c8] sm:$0xff] %v2539_v44  ;;  %v2545_v38 = vld [vmem:[%s4170_s18 + $0x1e0] sm:$0xff] }
 0x5d4   : >> { %2542 = vst [vmem:[%s4166_s19 + $0x1d0] sm:$0xff] %v2541_v2  ;;  %2544 = vst [vmem:[%s4166_s19 + $0x1d8] sm:$0xff] %v2543_v25  ;;  %v2547_v41 = vld [vmem:[%s4170_s18 + $0x1e8] sm:$0xff]  ;;  %v2549_v55 = vld [vmem:[%s4170_s18 + $0x1f0] sm:$0xff] }
 0x5d5   : >> { %2546 = vst [vmem:[%s4166_s19 + $0x1e0] sm:$0xff] %v2545_v38  ;;  %2548 = vst [vmem:[%s4166_s19 + $0x1e8] sm:$0xff] %v2547_v41  ;;  %v2551_v59 = vld [vmem:[%s4170_s18 + $0x1f8] sm:$0xff]  ;;  %s5470_s18 = smov %s5097_s27 }
 0x5d6   : >> { %2550 = vst [vmem:[%s4166_s19 + $0x1f0] sm:$0xff] %v2549_v55  ;;  %2552 = vst [vmem:[%s4166_s19 + $0x1f8] sm:$0xff] %v2551_v59  ;;  %s5469_s19 = smov %s5100_s23  ;;  %s5471_s23 = smov %s5487_s24 }
 0x5d7 PF: > { %s5206_s25 = sand.u32 63, %s2412_s16   ;;  %s3147_s0 = sshll.u32 %s5030_s15, 13 }
 0x5d8   : > { %s2564_s1 = sshra.s32 %s3147_s0, 4  ;;  %p3131_p13 = scmp.le.s32.totalorder %s5206_s25, 0 }
 0x5d9   : > { %s2565_s2 = scalar_lea.vmem %s4795_s29, %s2564_s1 [#allocation4]   ;;  %s2568_s3 = scalar_lea.vmem %s5017_s26, %s2564_s1  }
 0x5da   : > { %2870 = sbr.rel (%p3131_p13) target bundleno = 1515 (0x5eb), region = 205  ;;  %s4180_s27 = smov (!%p3131_p13), %s2568_s3  }
 0x5db   : > { %s4184_s24 = smov (!%p3131_p13), %s2565_s2   ;;  %s4188_s4 = smov (!%p3131_p13), 0  }
 0x5dc   : > { %s4192_s22 = smov (!%p3131_p13), 0  }
 0x5e1 LB: >> { %v2580_v61 = vld [vmem:[%s4186_s24] sm:$0xff]  ;;  %s2582_s16 = sadd.s32 1, %s4190_s4  ;;  %s2574_s22 = sadd.s32 1, %s4194_s22   ;;  %s4194_s22 = sphi %s4192_s22, %s2574_s22   ;;  %s4190_s4 = sphi %s4188_s4, %s4189_s4   ;;  %s4186_s24 = sphi %s4184_s24, %s2587_s24   ;;  %s4182_s27 = sphi %s4180_s27, %s2588_s27  }
 0x5e2   : >> { %2581 = vst [vmem:[%s4182_s27] sm:$0xff] %v2580_v61  ;;  %p2583_p0 = scmp.ge.s32.totalorder %s2582_s16, %s5206_s25  ;;  %p2573_p1 = scmp.ge.s32.totalorder %s2574_s22, %s5206_s25 }
 0x5e4   : >> { %s5489_s16 = smov (%p2583_p0, %s2582_s16), 0  ;;  %2576 = sbr.rel (!%p2573_p1) target bundleno = 1505 (0x5e1), region = 211 }
 0x5e5   : >> { %s3132_s0 = sshll.u32 %s5489_s16, 3  ;;  %s4189_s4 = smov %s5489_s16  }
 0x5e6   : >> { %s2587_s24 = scalar_lea.vmem %s2565_s2, %s3132_s0 [#allocation4]   ;;  %s2588_s27 = scalar_lea.vmem %s2568_s3, %s3132_s0  }
 0x5eb PF: > { %2591 = sbr.rel (%p2408_p4) target bundleno = 1586 (0x632), region = 125  ;;  %s5218_s1 = ssub.s32 (!%p2408_p4), %s5019_s28, %s5023_s21 }
 0x5ec   : > { %s2597_s4 = sshrl.u32 (!%p2408_p4), %s5019_s28, 3 }
 0x5ed   : > { %s5227_s18 = sshrl.u32 (!%p2408_p4), %s2597_s4, 6 }
 0x5ee   : > { %p3134_p2 = scmp.le.s32.totalorder (!%p2408_p4), %s5227_s18, 0 }
 0x5f2   : > { %2884 = sbr.rel (%p3134_p2) target bundleno = 1562 (0x61a), region = 216  ;;  %s5472_s2 = smov (!%p3134_p2), %s5017_s26 }
 0x5f3   : > { %s5473_s3 = smov (!%p3134_p2), %s4795_s29  ;;  %s5236_s23 = smov (!%p3134_p2), 0  }
 0x5f4   : > { %s5238_s25 = smov (!%p3134_p2), 0  }
 0x5f9 LB: >> { %v2610_v56 = vld [vmem:[%s4202_s3] sm:$0xff]  ;;  %v2612_v62 = vld [vmem:[%s4202_s3 + $0x8] sm:$0xff]  ;;  %v2614_v37 = vld [vmem:[%s4202_s3 + $0x10] sm:$0xff]  ;;  %s2738_s27 = sadd.s32 1, %s4206_s23  ;;  %s2604_s25 = sadd.s32 1, %s4210_s25   ;;  %s4210_s25 = sphi %s5238_s25, %s2604_s25   ;;  %s4206_s23 = sphi %s5236_s23, %s5476_s23   ;;  %s4202_s3 = sphi %s5473_s3, %s5475_s3   ;;  %s4198_s2 = sphi %s5472_s2, %s5474_s2  }
 0x5fa   : >> { %2611 = vst [vmem:[%s4198_s2] sm:$0xff] %v2610_v56  ;;  %2613 = vst [vmem:[%s4198_s2 + $0x8] sm:$0xff] %v2612_v62  ;;  %v2616_v42 = vld [vmem:[%s4202_s3 + $0x18] sm:$0xff]  ;;  %v2618_v63 = vld [vmem:[%s4202_s3 + $0x20] sm:$0xff]  ;;  %p2739_p3 = scmp.ge.s32.totalorder %s2738_s27, %s5227_s18  ;;  %p2603_p5 = scmp.ge.s32.totalorder %s2604_s25, %s5227_s18 }
 0x5fb   : >> { %2615 = vst [vmem:[%s4198_s2 + $0x10] sm:$0xff] %v2614_v37  ;;  %v2620_v0 = vld [vmem:[%s4202_s3 + $0x28] sm:$0xff]  ;;  %2617 = vst [vmem:[%s4198_s2 + $0x18] sm:$0xff] %v2616_v42  ;;  %v2622_v1 = vld [vmem:[%s4202_s3 + $0x30] sm:$0xff] }
 0x5fc   : >> { %2619 = vst [vmem:[%s4198_s2 + $0x20] sm:$0xff] %v2618_v63  ;;  %2621 = vst [vmem:[%s4198_s2 + $0x28] sm:$0xff] %v2620_v0  ;;  %v2624_v21 = vld [vmem:[%s4202_s3 + $0x38] sm:$0xff]  ;;  %v2626_v32 = vld [vmem:[%s4202_s3 + $0x40] sm:$0xff]  ;;  %s5491_s27 = smov (%p2739_p3, %s2738_s27), 0 }
 0x5fd   : >> { %2623 = vst [vmem:[%s4198_s2 + $0x30] sm:$0xff] %v2622_v1  ;;  %2625 = vst [vmem:[%s4198_s2 + $0x38] sm:$0xff] %v2624_v21  ;;  %v2628_v9 = vld [vmem:[%s4202_s3 + $0x48] sm:$0xff]  ;;  %v2630_v19 = vld [vmem:[%s4202_s3 + $0x50] sm:$0xff]  ;;  %s3135_s24 = sshll.u32 %s5491_s27, 9  ;;  %s5476_s23 = smov %s5491_s27 }
 0x5fe   : >> { %2627 = vst [vmem:[%s4198_s2 + $0x40] sm:$0xff] %v2626_v32  ;;  %v2632_v40 = vld [vmem:[%s4202_s3 + $0x58] sm:$0xff]  ;;  %2629 = vst [vmem:[%s4198_s2 + $0x48] sm:$0xff] %v2628_v9  ;;  %v2634_v35 = vld [vmem:[%s4202_s3 + $0x60] sm:$0xff]  ;;  %s5294_s22 = scalar_lea.vmem %s4795_s29, %s3135_s24 [#allocation4]   ;;  %s5297_s16 = scalar_lea.vmem %s5017_s26, %s3135_s24  }
 0x5ff   : >> { %2631 = vst [vmem:[%s4198_s2 + $0x50] sm:$0xff] %v2630_v19  ;;  %2633 = vst [vmem:[%s4198_s2 + $0x58] sm:$0xff] %v2632_v40  ;;  %v2636_v22 = vld [vmem:[%s4202_s3 + $0x68] sm:$0xff]  ;;  %v2638_v24 = vld [vmem:[%s4202_s3 + $0x70] sm:$0xff] }
 0x600   : >> { %2635 = vst [vmem:[%s4198_s2 + $0x60] sm:$0xff] %v2634_v35  ;;  %2637 = vst [vmem:[%s4198_s2 + $0x68] sm:$0xff] %v2636_v22  ;;  %v2640_v51 = vld [vmem:[%s4202_s3 + $0x78] sm:$0xff]  ;;  %v2642_v52 = vld [vmem:[%s4202_s3 + $0x80] sm:$0xff] }
 0x601   : >> { %2639 = vst [vmem:[%s4198_s2 + $0x70] sm:$0xff] %v2638_v24  ;;  %v2644_v7 = vld [vmem:[%s4202_s3 + $0x88] sm:$0xff]  ;;  %2641 = vst [vmem:[%s4198_s2 + $0x78] sm:$0xff] %v2640_v51  ;;  %v2646_v36 = vld [vmem:[%s4202_s3 + $0x90] sm:$0xff] }
 0x602   : >> { %2643 = vst [vmem:[%s4198_s2 + $0x80] sm:$0xff] %v2642_v52  ;;  %2645 = vst [vmem:[%s4198_s2 + $0x88] sm:$0xff] %v2644_v7  ;;  %v2648_v49 = vld [vmem:[%s4202_s3 + $0x98] sm:$0xff]  ;;  %v2650_v58 = vld [vmem:[%s4202_s3 + $0xa0] sm:$0xff] }
 0x603   : >> { %2647 = vst [vmem:[%s4198_s2 + $0x90] sm:$0xff] %v2646_v36  ;;  %2649 = vst [vmem:[%s4198_s2 + $0x98] sm:$0xff] %v2648_v49  ;;  %v2652_v23 = vld [vmem:[%s4202_s3 + $0xa8] sm:$0xff]  ;;  %v2654_v8 = vld [vmem:[%s4202_s3 + $0xb0] sm:$0xff] }
 0x604   : >> { %2651 = vst [vmem:[%s4198_s2 + $0xa0] sm:$0xff] %v2650_v58  ;;  %v2656_v17 = vld [vmem:[%s4202_s3 + $0xb8] sm:$0xff]  ;;  %2653 = vst [vmem:[%s4198_s2 + $0xa8] sm:$0xff] %v2652_v23  ;;  %v2658_v14 = vld [vmem:[%s4202_s3 + $0xc0] sm:$0xff] }
 0x605   : >> { %2655 = vst [vmem:[%s4198_s2 + $0xb0] sm:$0xff] %v2654_v8  ;;  %2657 = vst [vmem:[%s4198_s2 + $0xb8] sm:$0xff] %v2656_v17  ;;  %v2660_v28 = vld [vmem:[%s4202_s3 + $0xc8] sm:$0xff]  ;;  %v2662_v26 = vld [vmem:[%s4202_s3 + $0xd0] sm:$0xff] }
 0x606   : >> { %2659 = vst [vmem:[%s4198_s2 + $0xc0] sm:$0xff] %v2658_v14  ;;  %2661 = vst [vmem:[%s4198_s2 + $0xc8] sm:$0xff] %v2660_v28  ;;  %v2664_v30 = vld [vmem:[%s4202_s3 + $0xd8] sm:$0xff]  ;;  %v2666_v43 = vld [vmem:[%s4202_s3 + $0xe0] sm:$0xff] }
 0x607   : >> { %2663 = vst [vmem:[%s4198_s2 + $0xd0] sm:$0xff] %v2662_v26  ;;  %v2668_v45 = vld [vmem:[%s4202_s3 + $0xe8] sm:$0xff]  ;;  %2665 = vst [vmem:[%s4198_s2 + $0xd8] sm:$0xff] %v2664_v30  ;;  %v2670_v48 = vld [vmem:[%s4202_s3 + $0xf0] sm:$0xff] }
 0x608   : >> { %2667 = vst [vmem:[%s4198_s2 + $0xe0] sm:$0xff] %v2666_v43  ;;  %2669 = vst [vmem:[%s4198_s2 + $0xe8] sm:$0xff] %v2668_v45  ;;  %v2672_v50 = vld [vmem:[%s4202_s3 + $0xf8] sm:$0xff]  ;;  %v2674_v57 = vld [vmem:[%s4202_s3 + $0x100] sm:$0xff] }
 0x609   : >> { %2671 = vst [vmem:[%s4198_s2 + $0xf0] sm:$0xff] %v2670_v48  ;;  %2673 = vst [vmem:[%s4198_s2 + $0xf8] sm:$0xff] %v2672_v50  ;;  %v2676_v34 = vld [vmem:[%s4202_s3 + $0x108] sm:$0xff]  ;;  %v2678_v13 = vld [vmem:[%s4202_s3 + $0x110] sm:$0xff] }
 0x60a   : >> { %2675 = vst [vmem:[%s4198_s2 + $0x100] sm:$0xff] %v2674_v57  ;;  %v2680_v15 = vld [vmem:[%s4202_s3 + $0x118] sm:$0xff]  ;;  %2677 = vst [vmem:[%s4198_s2 + $0x108] sm:$0xff] %v2676_v34  ;;  %v2682_v16 = vld [vmem:[%s4202_s3 + $0x120] sm:$0xff] }
 0x60b   : >> { %2679 = vst [vmem:[%s4198_s2 + $0x110] sm:$0xff] %v2678_v13  ;;  %2681 = vst [vmem:[%s4198_s2 + $0x118] sm:$0xff] %v2680_v15  ;;  %v2684_v20 = vld [vmem:[%s4202_s3 + $0x128] sm:$0xff]  ;;  %v2686_v5 = vld [vmem:[%s4202_s3 + $0x130] sm:$0xff] }
 0x60c   : >> { %2683 = vst [vmem:[%s4198_s2 + $0x120] sm:$0xff] %v2682_v16  ;;  %2685 = vst [vmem:[%s4198_s2 + $0x128] sm:$0xff] %v2684_v20  ;;  %v2688_v39 = vld [vmem:[%s4202_s3 + $0x138] sm:$0xff]  ;;  %v2690_v11 = vld [vmem:[%s4202_s3 + $0x140] sm:$0xff] }
 0x60d   : >> { %2687 = vst [vmem:[%s4198_s2 + $0x130] sm:$0xff] %v2686_v5  ;;  %v2692_v12 = vld [vmem:[%s4202_s3 + $0x148] sm:$0xff]  ;;  %2689 = vst [vmem:[%s4198_s2 + $0x138] sm:$0xff] %v2688_v39  ;;  %v2694_v6 = vld [vmem:[%s4202_s3 + $0x150] sm:$0xff] }
 0x60e   : >> { %2691 = vst [vmem:[%s4198_s2 + $0x140] sm:$0xff] %v2690_v11  ;;  %2693 = vst [vmem:[%s4198_s2 + $0x148] sm:$0xff] %v2692_v12  ;;  %v2696_v18 = vld [vmem:[%s4202_s3 + $0x158] sm:$0xff]  ;;  %v2698_v33 = vld [vmem:[%s4202_s3 + $0x160] sm:$0xff] }
 0x60f   : >> { %2695 = vst [vmem:[%s4198_s2 + $0x150] sm:$0xff] %v2694_v6  ;;  %2697 = vst [vmem:[%s4198_s2 + $0x158] sm:$0xff] %v2696_v18  ;;  %v2700_v46 = vld [vmem:[%s4202_s3 + $0x168] sm:$0xff]  ;;  %v2702_v10 = vld [vmem:[%s4202_s3 + $0x170] sm:$0xff] }
 0x610   : >> { %2699 = vst [vmem:[%s4198_s2 + $0x160] sm:$0xff] %v2698_v33  ;;  %v2704_v4 = vld [vmem:[%s4202_s3 + $0x178] sm:$0xff]  ;;  %2701 = vst [vmem:[%s4198_s2 + $0x168] sm:$0xff] %v2700_v46  ;;  %v2706_v53 = vld [vmem:[%s4202_s3 + $0x180] sm:$0xff] }
 0x611   : >> { %2703 = vst [vmem:[%s4198_s2 + $0x170] sm:$0xff] %v2702_v10  ;;  %2705 = vst [vmem:[%s4198_s2 + $0x178] sm:$0xff] %v2704_v4  ;;  %v2708_v54 = vld [vmem:[%s4202_s3 + $0x188] sm:$0xff]  ;;  %v2710_v60 = vld [vmem:[%s4202_s3 + $0x190] sm:$0xff] }
 0x612   : >> { %2707 = vst [vmem:[%s4198_s2 + $0x180] sm:$0xff] %v2706_v53  ;;  %2709 = vst [vmem:[%s4198_s2 + $0x188] sm:$0xff] %v2708_v54  ;;  %v2712_v3 = vld [vmem:[%s4202_s3 + $0x198] sm:$0xff]  ;;  %v2714_v47 = vld [vmem:[%s4202_s3 + $0x1a0] sm:$0xff] }
 0x613   : >> { %2711 = vst [vmem:[%s4198_s2 + $0x190] sm:$0xff] %v2710_v60  ;;  %v2716_v27 = vld [vmem:[%s4202_s3 + $0x1a8] sm:$0xff]  ;;  %2713 = vst [vmem:[%s4198_s2 + $0x198] sm:$0xff] %v2712_v3  ;;  %v2718_v29 = vld [vmem:[%s4202_s3 + $0x1b0] sm:$0xff]  ;;  %2606 = sbr.rel (!%p2603_p5) target bundleno = 1529 (0x5f9), region = 222 }
 0x614   : >> { %2715 = vst [vmem:[%s4198_s2 + $0x1a0] sm:$0xff] %v2714_v47  ;;  %2717 = vst [vmem:[%s4198_s2 + $0x1a8] sm:$0xff] %v2716_v27  ;;  %v2720_v31 = vld [vmem:[%s4202_s3 + $0x1b8] sm:$0xff]  ;;  %v2722_v44 = vld [vmem:[%s4202_s3 + $0x1c0] sm:$0xff] }
 0x615   : >> { %2719 = vst [vmem:[%s4198_s2 + $0x1b0] sm:$0xff] %v2718_v29  ;;  %2721 = vst [vmem:[%s4198_s2 + $0x1b8] sm:$0xff] %v2720_v31  ;;  %v2724_v2 = vld [vmem:[%s4202_s3 + $0x1c8] sm:$0xff]  ;;  %v2726_v25 = vld [vmem:[%s4202_s3 + $0x1d0] sm:$0xff] }
 0x616   : >> { %2723 = vst [vmem:[%s4198_s2 + $0x1c0] sm:$0xff] %v2722_v44  ;;  %v2728_v38 = vld [vmem:[%s4202_s3 + $0x1d8] sm:$0xff]  ;;  %2725 = vst [vmem:[%s4198_s2 + $0x1c8] sm:$0xff] %v2724_v2  ;;  %v2730_v41 = vld [vmem:[%s4202_s3 + $0x1e0] sm:$0xff] }
 0x617   : >> { %2727 = vst [vmem:[%s4198_s2 + $0x1d0] sm:$0xff] %v2726_v25  ;;  %2729 = vst [vmem:[%s4198_s2 + $0x1d8] sm:$0xff] %v2728_v38  ;;  %v2732_v55 = vld [vmem:[%s4202_s3 + $0x1e8] sm:$0xff]  ;;  %v2734_v59 = vld [vmem:[%s4202_s3 + $0x1f0] sm:$0xff] }
 0x618   : >> { %2731 = vst [vmem:[%s4198_s2 + $0x1e0] sm:$0xff] %v2730_v41  ;;  %2733 = vst [vmem:[%s4198_s2 + $0x1e8] sm:$0xff] %v2732_v55  ;;  %v2736_v61 = vld [vmem:[%s4202_s3 + $0x1f8] sm:$0xff]  ;;  %s5475_s3 = smov %s5294_s22 }
 0x619   : >> { %2735 = vst [vmem:[%s4198_s2 + $0x1f0] sm:$0xff] %v2734_v59  ;;  %2737 = vst [vmem:[%s4198_s2 + $0x1f8] sm:$0xff] %v2736_v61  ;;  %s5474_s2 = smov %s5297_s16 }
 0x61a PF: > { %s5403_s0 = sand.u32 63, %s2597_s4   ;;  %s3149_s24 = sshll.u32 %s5227_s18, 13 }
 0x61b   : > { %s2749_s19 = sshra.s32 %s3149_s24, 4  ;;  %p3140_p6 = scmp.le.s32.totalorder %s5403_s0, 0 }
 0x61c   : > { %s2750_s15 = scalar_lea.vmem %s4795_s29, %s2749_s19 [#allocation4]   ;;  %s2753_s5 = scalar_lea.vmem %s5017_s26, %s2749_s19  }
 0x61d   : > { %2898 = sbr.rel (%p3140_p6) target bundleno = 1582 (0x62e), region = 227  ;;  %s4212_s22 = smov (!%p3140_p6), %s2753_s5  }
 0x61e   : > { %s4216_s27 = smov (!%p3140_p6), %s2750_s15   ;;  %s4220_s16 = smov (!%p3140_p6), 0  }
 0x61f   : > { %s4224_s25 = smov (!%p3140_p6), 0  }
 0x624 LB: >> { %v2765_v56 = vld [vmem:[%s4218_s27] sm:$0xff]  ;;  %s2767_s4 = sadd.s32 1, %s4222_s16  ;;  %s2759_s25 = sadd.s32 1, %s4226_s25   ;;  %s4226_s25 = sphi %s4224_s25, %s2759_s25   ;;  %s4222_s16 = sphi %s4220_s16, %s4221_s16   ;;  %s4218_s27 = sphi %s4216_s27, %s2772_s27   ;;  %s4214_s22 = sphi %s4212_s22, %s2773_s22  }
 0x625   : >> { %2766 = vst [vmem:[%s4214_s22] sm:$0xff] %v2765_v56  ;;  %p2768_p7 = scmp.ge.s32.totalorder %s2767_s4, %s5403_s0  ;;  %p2758_p8 = scmp.ge.s32.totalorder %s2759_s25, %s5403_s0 }
 0x627   : >> { %s5493_s4 = smov (%p2768_p7, %s2767_s4), 0  ;;  %2761 = sbr.rel (!%p2758_p8) target bundleno = 1572 (0x624), region = 233 }
 0x628   : >> { %s3141_s19 = sshll.u32 %s5493_s4, 3  ;;  %s4221_s16 = smov %s5493_s4  }
 0x629   : >> { %s2772_s27 = scalar_lea.vmem %s2750_s15, %s3141_s19 [#allocation4]   ;;  %s2773_s22 = scalar_lea.vmem %s2753_s5, %s3141_s19  }
 0x62e PF: > { %s4230_s18 = smov 0   ;;  %s5477_s3 = scalar_lea.vmem %s4795_s29, %s5218_s1 [#allocation4] }
 0x62f   : > { %s2774_s2 = sshllo.u32 %s4230_s18, %s5023_s21  ;;  %s5478_s23 = scalar_lea.vmem %s5017_s26, %s5218_s1 }
 0x630   : > { %v2783_v62 = vld [vmem:[%s5477_s3] sm:%s2774_s2] }
 0x631   : > { %2784 = vst [vmem:[%s5478_s23] sm:%s2774_s2] %v2783_v62 }
 0x632 PF: > { %p3143_p4 = scmp.ge.u32.totalorder %s5019_s28, 8 }
 0x633   : > { %s4231_s24 = smov (!%p3143_p4), 0  }
 0x634   : > { %2395 = sbr.rel (%p3143_p4) target bundleno = 1595 (0x63b), region = 96  ;;  %s2396_s5 = sshllo.u32 (!%p3143_p4), %s4231_s24, %s5019_s28 }
 0x635   : > { %v2405_v37 = vld [vmem:[%s4795_s29] sm:%s2396_s5] (!%p3143_p4) }
 0x636   : > { %2406 = vst [vmem:[%s5017_s26] sm:%s2396_s5] (!%p3143_p4), %v2405_v37 }
 0x63b PF: > { %p22_p9 = scmp.ge.s32.totalorder %s4322_s17, 4   ;;  %s5479_s29 = smov %s4158_s30 }
 0x63c   : > { %s5480_s30 = smov %s4330_s20  ;;  %s5481_s15 = smov %s4322_s17 }
 0x63d   :  { %24 = sbr.rel (!%p22_p9) target bundleno = 9 (0x9), region = 244 }
 0x644   :  { %2798 = vsyncpa [#allocation3], 1 }
 0x645   :  { %2800 = vsyncpa [#allocation3 + $0x1], 1 }

</bundles_post_ra>
